<compile_context>
chip_gen: v7x
topology: tpu7x:2x2x1
jax: 0.10.0
libtpu: 0.0.40
codegen_flags: <defaults>
</compile_context>

<pallas_src>
import functools
import math

import jax
import jax.numpy as jnp
from jax.experimental import pallas as pl
from jax.experimental.pallas import tpu as pltpu


def _vmem_limit_bytes():
    # 128 MiB physical on v5e/v6e, 64 MiB on v7x; keep 25% headroom for Mosaic internals.
    try:
        cap = pltpu.get_tpu_info().vmem_capacity_bytes
    except Exception:
        cap = 64 * 1024 * 1024
    return int(cap) * 3 // 4


_CPARAMS = pltpu.CompilerParams(
    dimension_semantics=("parallel",),
    vmem_limit_bytes=_vmem_limit_bytes(),
)


def _row_tile(n, cap=512):
    """Largest row tile <= cap that evenly divides n (multiples of 8); else untiled."""
    if n <= cap:
        return n
    for t in range(cap, 0, -8):
        if n % t == 0:
            return t
    return n


# ----------------------------- in-kernel helpers -----------------------------

def _attn_core(q, k, v, mask, nheads, out_scr):
    """q: [T, E] f32 (Q-scale pre-folded), k/v: [S, E] f32, mask: [T, S] f32 or None.

    Writes the concatenated per-head attention output directly into out_scr ([T, E] VMEM),
    one lane-slice per head (no jnp.concatenate, no K transpose).
    """
    t, e = q.shape
    d = e // nheads
    qb = q.astype(jnp.bfloat16)
    kb = k.astype(jnp.bfloat16)
    vb = v.astype(jnp.bfloat16)
    for h in range(nheads):
        qh = qb[:, h * d:(h + 1) * d]
        kh = kb[:, h * d:(h + 1) * d]
        vh = vb[:, h * d:(h + 1) * d]
        # contract the last dims of both operands -> no in-kernel transpose of K.
        sc = jax.lax.dot_general(qh, kh, (((1,), (1,)), ((), ())),
                                 preferred_element_type=jnp.float32)
        if mask is not None:
            sc = sc + mask
        sc = sc - jnp.max(sc, axis=-1, keepdims=True)
        p = jnp.exp(sc)
        denom = jnp.maximum(jnp.sum(p, axis=-1, keepdims=True), 1e-30)  # guard fully-masked rows
        p = p * pl.reciprocal(denom, approx=True)
        out_scr[:, h * d:(h + 1) * d] = jnp.dot(p.astype(jnp.bfloat16), vh,
                                                preferred_element_type=jnp.float32)


def _add_ln_out(resid, attn, wo, bo, gamma, beta, o_ref, eps):
    """o_ref[0] = LayerNorm(resid + attn @ wo + bo)."""
    y = jnp.dot(attn.astype(jnp.bfloat16), wo, preferred_element_type=jnp.float32) + bo
    z = resid + y
    mu = jnp.mean(z, axis=-1, keepdims=True)
    zc = z - mu
    var = jnp.mean(zc * zc, axis=-1, keepdims=True)
    o_ref[0] = zc * jax.lax.rsqrt(var + eps) * gamma + beta


# ----------------------------- Pallas kernels -----------------------------

def _self_attn_block_kernel(x_ref, wqkv_ref, bqkv_ref, wo_ref, bo_ref, g_ref, beta_ref,
                            *rest, nheads, eps, masked):
    # out = LayerNorm(x + MHA(x, x, x) @ Wo + bo); one grid step per batch element.
    if masked:
        m_ref, o_ref, attn_scr = rest
        mask = m_ref[...]
    else:
        o_ref, attn_scr = rest
        mask = None
    x = x_ref[0]                                   # [T, E] f32
    e = x.shape[-1]
    qkv = jnp.dot(x.astype(jnp.bfloat16), wqkv_ref[...],
                  preferred_element_type=jnp.float32) + bqkv_ref[...]
    _attn_core(qkv[:, :e], qkv[:, e:2 * e], qkv[:, 2 * e:], mask, nheads, attn_scr)
    _add_ln_out(x, attn_scr[...], wo_ref[...], bo_ref[...], g_ref[...], beta_ref[...],
                o_ref, eps)


def _cross_attn_block_kernel(x_ref, mem_ref, wq_ref, bq_ref, wkv_ref, bkv_ref,
                             wo_ref, bo_ref, g_ref, beta_ref, *rest, nheads, eps, masked):
    # out = LayerNorm(x + MHA(x, mem, mem) @ Wo + bo); one grid step per batch element.
    if masked:
        m_ref, o_ref, attn_scr = rest
        mask = m_ref[...]
    else:
        o_ref, attn_scr = rest
        mask = None
    x = x_ref[0]                                   # [T, E] f32
    mem = mem_ref[0]                               # [S, E] f32
    e = x.shape[-1]
    q = jnp.dot(x.astype(jnp.bfloat16), wq_ref[...],
                preferred_element_type=jnp.float32) + bq_ref[...]
    kv = jnp.dot(mem.astype(jnp.bfloat16), wkv_ref[...],
                 preferred_element_type=jnp.float32) + bkv_ref[...]
    _attn_core(q, kv[:, :e], kv[:, e:], mask, nheads, attn_scr)
    _add_ln_out(x, attn_scr[...], wo_ref[...], bo_ref[...], g_ref[...], beta_ref[...],
                o_ref, eps)


def _ffn_add_ln_kernel(x_ref, w1_ref, b1_ref, w2_ref, b2_ref, g_ref, beta_ref, o_ref, *, eps):
    # out = LayerNorm(x + relu(x @ w1 + b1) @ w2 + b2); [tile, FFN] intermediate stays in VMEM.
    x = x_ref[...]
    h = jnp.dot(x.astype(jnp.bfloat16), w1_ref[...],
                preferred_element_type=jnp.float32) + b1_ref[...]
    h = jnp.maximum(h, 0.0)
    y = jnp.dot(h.astype(jnp.bfloat16), w2_ref[...],
                preferred_element_type=jnp.float32) + b2_ref[...]
    z = x + y
    mu = jnp.mean(z, axis=-1, keepdims=True)
    zc = z - mu
    var = jnp.mean(zc * zc, axis=-1, keepdims=True)
    o_ref[...] = zc * jax.lax.rsqrt(var + eps) * g_ref[...] + beta_ref[...]


def _layernorm_kernel(x_ref, g_ref, b_ref, o_ref, *, eps):
    x = x_ref[...]
    mu = jnp.mean(x, axis=-1, keepdims=True)
    xc = x - mu
    var = jnp.mean(xc * xc, axis=-1, keepdims=True)
    o_ref[...] = xc * jax.lax.rsqrt(var + eps) * g_ref[...] + b_ref[...]


# ----------------------------- pallas_call wrappers -----------------------------

def self_attn_block(x, wqkv, bqkv, wo, bo, gamma, beta, add_mask, nheads, eps=1e-5):
    """x: [B, T, E] -> LayerNorm(x + SelfAttention(x) Wo + bo), fused in one kernel."""
    b, t, e = x.shape
    kernel = functools.partial(_self_attn_block_kernel, nheads=nheads, eps=eps,
                               masked=add_mask is not None)
    in_specs = [
        pl.BlockSpec((1, t, e), lambda i: (i, 0, 0)),      # x (per-batch block)
        pl.BlockSpec((e, 3 * e), lambda i: (0, 0)),        # Wqkv (resident bf16)
        pl.BlockSpec((1, 3 * e), lambda i: (0, 0)),        # bqkv
        pl.BlockSpec((e, e), lambda i: (0, 0)),            # Wo
        pl.BlockSpec((1, e), lambda i: (0, 0)),            # bo
        pl.BlockSpec((1, e), lambda i: (0, 0)),            # ln gamma
        pl.BlockSpec((1, e), lambda i: (0, 0)),            # ln beta
    ]
    args = [x, wqkv, bqkv, wo, bo, gamma, beta]
    if add_mask is not None:
        in_specs.append(pl.BlockSpec((t, t), lambda i: (0, 0)))   # broadcast additive mask
        args.append(add_mask.astype(jnp.float32))
    return pl.pallas_call(
        kernel,
        out_shape=jax.ShapeDtypeStruct((b, t, e), jnp.float32),
        grid=(b,),
        in_specs=in_specs,
        out_specs=pl.BlockSpec((1, t, e), lambda i: (i, 0, 0)),
        scratch_shapes=[pltpu.VMEM((t, e), jnp.float32)],          # concat-heads buffer
        compiler_params=_CPARAMS,
    )(*args)


def cross_attn_block(x, memory, wq, bq, wkv, bkv, wo, bo, gamma, beta, add_mask, nheads,
                     eps=1e-5):
    """x: [B, T, E], memory: [B, S, E] -> LayerNorm(x + CrossAttention(x, mem) Wo + bo)."""
    b, t, e = x.shape
    s = memory.shape[1]
    kernel = functools.partial(_cross_attn_block_kernel, nheads=nheads, eps=eps,
                               masked=add_mask is not None)
    in_specs = [
        pl.BlockSpec((1, t, e), lambda i: (i, 0, 0)),      # x
        pl.BlockSpec((1, s, e), lambda i: (i, 0, 0)),      # memory
        pl.BlockSpec((e, e), lambda i: (0, 0)),            # Wq
        pl.BlockSpec((1, e), lambda i: (0, 0)),            # bq
        pl.BlockSpec((e, 2 * e), lambda i: (0, 0)),        # Wkv
        pl.BlockSpec((1, 2 * e), lambda i: (0, 0)),        # bkv
        pl.BlockSpec((e, e), lambda i: (0, 0)),            # Wo
        pl.BlockSpec((1, e), lambda i: (0, 0)),            # bo
        pl.BlockSpec((1, e), lambda i: (0, 0)),            # ln gamma
        pl.BlockSpec((1, e), lambda i: (0, 0)),            # ln beta
    ]
    args = [x, memory, wq, bq, wkv, bkv, wo, bo, gamma, beta]
    if add_mask is not None:
        in_specs.append(pl.BlockSpec((t, s), lambda i: (0, 0)))
        args.append(add_mask.astype(jnp.float32))
    return pl.pallas_call(
        kernel,
        out_shape=jax.ShapeDtypeStruct((b, t, e), jnp.float32),
        grid=(b,),
        in_specs=in_specs,
        out_specs=pl.BlockSpec((1, t, e), lambda i: (i, 0, 0)),
        scratch_shapes=[pltpu.VMEM((t, e), jnp.float32)],
        compiler_params=_CPARAMS,
    )(*args)


def ffn_add_ln(x, w1, b1, w2, b2, gamma, beta, eps=1e-5):
    """LayerNorm(x + relu(x @ w1 + b1) @ w2 + b2); x: [N, E], row-tiled grid."""
    n, e = x.shape
    f = w1.shape[1]
    tile = _row_tile(n)
    return pl.pallas_call(
        functools.partial(_ffn_add_ln_kernel, eps=eps),
        out_shape=jax.ShapeDtypeStruct((n, e), jnp.float32),
        grid=(n // tile,),
        in_specs=[pl.BlockSpec((tile, e), lambda i: (i, 0)),
                  pl.BlockSpec((e, f), lambda i: (0, 0)),
                  pl.BlockSpec((1, f), lambda i: (0, 0)),
                  pl.BlockSpec((f, e), lambda i: (0, 0)),
                  pl.BlockSpec((1, e), lambda i: (0, 0)),
                  pl.BlockSpec((1, e), lambda i: (0, 0)),
                  pl.BlockSpec((1, e), lambda i: (0, 0))],
        out_specs=pl.BlockSpec((tile, e), lambda i: (i, 0)),
        compiler_params=_CPARAMS,
    )(x, w1, b1, w2, b2, gamma, beta)


def layernorm(x, gamma, beta, eps=1e-5):
    n, e = x.shape
    tile = _row_tile(n)
    return pl.pallas_call(
        functools.partial(_layernorm_kernel, eps=eps),
        out_shape=jax.ShapeDtypeStruct((n, e), jnp.float32),
        grid=(n // tile,),
        in_specs=[pl.BlockSpec((tile, e), lambda i: (i, 0)),
                  pl.BlockSpec((1, e), lambda i: (0, 0)),
                  pl.BlockSpec((1, e), lambda i: (0, 0))],
        out_specs=pl.BlockSpec((tile, e), lambda i: (i, 0)),
        compiler_params=_CPARAMS,
    )(x, gamma, beta)


# ----------------------------- decoder layer / stack -----------------------------

def decoder_layer_fwd(x, memory, p, nheads, tgt_mask, memory_mask):
    """x: [B, T, E], memory: [B, S, E]; post-norm TransformerDecoderLayer, ReLU FFN, eval."""
    b, t, e = x.shape
    x = self_attn_block(x, p["sa_wqkv"], p["sa_bqkv"], p["sa_wo"], p["sa_bo"],
                        p["ln1_w"], p["ln1_b"], tgt_mask, nheads)
    x = cross_attn_block(x, memory, p["ca_wq"], p["ca_bq"], p["ca_wkv"], p["ca_bkv"],
                         p["ca_wo"], p["ca_bo"], p["ln2_w"], p["ln2_b"], memory_mask, nheads)
    x = ffn_add_ln(x.reshape(b * t, e), p["w1"], p["b1"], p["w2"], p["b2"],
                   p["ln3_w"], p["ln3_b"]).reshape(b, t, e)
    return x


def transformer_decoder_fwd(tgt, memory, layer_params, final_norm, nheads,
                            tgt_mask=None, memory_mask=None):
    # TODO(synk): tgt/memory key-padding masks not implemented; they would fold into the
    # per-batch additive masks the same way tgt_mask/memory_mask do.
    t, b, e = tgt.shape
    x = jnp.transpose(tgt, (1, 0, 2))        # [B, T, E]  (single transpose at entry)
    mem = jnp.transpose(memory, (1, 0, 2))   # [B, S, E]
    for p in layer_params:
        x = decoder_layer_fwd(x, mem, p, nheads, tgt_mask, memory_mask)
    if final_norm is not None:
        x = layernorm(x.reshape(b * t, e), final_norm["w"], final_norm["b"]).reshape(b, t, e)
    return jnp.transpose(x, (1, 0, 2))       # back to [T, B, E]


# ----------------------------- parameter init -----------------------------

def init_params(key, embed, ffn, nheads):
    d = embed // nheads
    q_scale = 1.0 / math.sqrt(d)

    def nrm(k, shape, scale=0.02):
        return scale * jax.random.normal(k, shape, jnp.float32)

    ks = jax.random.split(key, 7)
    zeros = lambda n: jnp.zeros((1, n), jnp.float32)
    ones = lambda n: jnp.ones((1, n), jnp.float32)

    # packed self-attention in-proj, pre-transposed to [E_in, 3E]; fold 1/sqrt(head_dim) into Wq.
    # (bq is zero here; if biases become nonzero the scale must be applied to bq as well.)
    w_qkv = nrm(ks[0], (embed, 3 * embed))
    w_qkv = w_qkv.at[:, :embed].multiply(q_scale)
    w_q_cross = nrm(ks[2], (embed, embed)) * q_scale
    w_kv_cross = nrm(ks[3], (embed, 2 * embed))

    layer = {
        # self-attention (weights pre-transposed [E_in, E_out], bf16 for the MXU)
        "sa_wqkv": w_qkv.astype(jnp.bfloat16), "sa_bqkv": zeros(3 * embed),
        "sa_wo": nrm(ks[1], (embed, embed)).astype(jnp.bfloat16), "sa_bo": zeros(embed),
        # cross-attention
        "ca_wq": w_q_cross.astype(jnp.bfloat16), "ca_bq": zeros(embed),
        "ca_wkv": w_kv_cross.astype(jnp.bfloat16), "ca_bkv": zeros(2 * embed),
        "ca_wo": nrm(ks[4], (embed, embed)).astype(jnp.bfloat16), "ca_bo": zeros(embed),
        # feed-forward
        "w1": nrm(ks[5], (embed, ffn)).astype(jnp.bfloat16), "b1": zeros(ffn),
        "w2": nrm(ks[6], (ffn, embed)).astype(jnp.bfloat16), "b2": zeros(embed),
        # layer norms (f32)
        "ln1_w": ones(embed), "ln1_b": zeros(embed),
        "ln2_w": ones(embed), "ln2_b": zeros(embed),
        "ln3_w": ones(embed), "ln3_b": zeros(embed),
    }
    final_norm = {"w": ones(embed), "b": zeros(embed)}
    return layer, final_norm


# ----------------------------- main -----------------------------

if __name__ == "__main__":
    T, S, B, E, H, FFN, NUM_LAYERS = 8, 16, 2, 32, 4, 64, 2

    key = jax.random.PRNGKey(0)
    k_tgt, k_mem, k_par = jax.random.split(key, 3)

    tgt = jax.random.normal(k_tgt, (T, B, E), jnp.float32)     # [tgt_len, batch, embed]
    memory = jax.random.normal(k_mem, (S, B, E), jnp.float32)  # [src_len, batch, embed]

    # causal tgt_mask [T, T] (additive), no memory mask
    row = jnp.arange(T)[:, None]
    col = jnp.arange(T)[None, :]
    tgt_mask = jnp.where(col > row, jnp.float32(-1e30), jnp.float32(0.0))

    # _get_clones deep-copies -> identical params in every layer
    layer_p, final_norm = init_params(k_par, E, FFN, H)
    layer_params = [layer_p] * NUM_LAYERS

    fwd = jax.jit(transformer_decoder_fwd, static_argnums=(4,))
    out = fwd(tgt, memory, layer_params, final_norm, H, tgt_mask, None)
    out = jax.block_until_ready(out)
    assert out.shape == (T, B, E)
    assert bool(jnp.all(jnp.isfinite(out)))
    print("KERNEL_OK")
</pallas_src>

<mosaic_0001>
module attributes {stable_mosaic.version = 11 : i64} {
  func.func @_cross_attn_block_kernel(%arg0: i32, %arg1: memref<1x8x32xf32, #tpu.memory_space<vmem>>, %arg2: memref<1x16x32xf32, #tpu.memory_space<vmem>>, %arg3: memref<32x32xbf16, #tpu.memory_space<vmem>>, %arg4: memref<1x32xf32, #tpu.memory_space<vmem>>, %arg5: memref<32x64xbf16, #tpu.memory_space<vmem>>, %arg6: memref<1x64xf32, #tpu.memory_space<vmem>>, %arg7: memref<32x32xbf16, #tpu.memory_space<vmem>>, %arg8: memref<1x32xf32, #tpu.memory_space<vmem>>, %arg9: memref<1x32xf32, #tpu.memory_space<vmem>>, %arg10: memref<1x32xf32, #tpu.memory_space<vmem>>, %arg11: memref<1x8x32xf32, #tpu.memory_space<vmem>>, %arg12: memref<8x32xf32, #tpu.memory_space<vmem>>) attributes {dimension_semantics = [#tpu.dimension_semantics<parallel>], iteration_bounds = array<i64: 2>, scalar_prefetch = 0 : i64, scratch_operands = 1 : i64, tpu.core_type = #tpu.core_type<tc>, window_params = [{transform_indices = @transform_0, window_bounds = array<i64: 1, 8, 32>}, {transform_indices = @transform_1, window_bounds = array<i64: 1, 16, 32>}, {pipeline_mode = #tpu.pipeline_mode<synchronous>, transform_indices = @transform_2, window_bounds = array<i64: 32, 32>}, {pipeline_mode = #tpu.pipeline_mode<synchronous>, transform_indices = @transform_3, window_bounds = array<i64: 1, 32>}, {pipeline_mode = #tpu.pipeline_mode<synchronous>, transform_indices = @transform_4, window_bounds = array<i64: 32, 64>}, {pipeline_mode = #tpu.pipeline_mode<synchronous>, transform_indices = @transform_5, window_bounds = array<i64: 1, 64>}, {pipeline_mode = #tpu.pipeline_mode<synchronous>, transform_indices = @transform_6, window_bounds = array<i64: 32, 32>}, {pipeline_mode = #tpu.pipeline_mode<synchronous>, transform_indices = @transform_7, window_bounds = array<i64: 1, 32>}, {pipeline_mode = #tpu.pipeline_mode<synchronous>, transform_indices = @transform_8, window_bounds = array<i64: 1, 32>}, {pipeline_mode = #tpu.pipeline_mode<synchronous>, transform_indices = @transform_9, window_bounds = array<i64: 1, 32>}, {transform_indices = @transform_10, window_bounds = array<i64: 1, 8, 32>}]} {
    %c0 = arith.constant 0 : index
    %c0_0 = arith.constant 0 : index
    %c0_1 = arith.constant 0 : index
    %0 = vector.load %arg1[%c0, %c0_0, %c0_1] : memref<1x8x32xf32, #tpu.memory_space<vmem>>, vector<1x8x32xf32>
    %1 = vector.shape_cast %0 : vector<1x8x32xf32> to vector<8x32xf32>
    %c0_2 = arith.constant 0 : index
    %c0_3 = arith.constant 0 : index
    %c0_4 = arith.constant 0 : index
    %2 = vector.load %arg2[%c0_2, %c0_3, %c0_4] : memref<1x16x32xf32, #tpu.memory_space<vmem>>, vector<1x16x32xf32>
    %3 = vector.shape_cast %2 : vector<1x16x32xf32> to vector<16x32xf32>
    %4 = arith.truncf %1 : vector<8x32xf32> to vector<8x32xbf16>
    %c0_5 = arith.constant 0 : index
    %c0_6 = arith.constant 0 : index
    %5 = vector.load %arg3[%c0_5, %c0_6] : memref<32x32xbf16, #tpu.memory_space<vmem>>, vector<32x32xbf16>
    %cst = arith.constant dense<0.000000e+00> : vector<8x32xf32>
    %6 = tpu.matmul %4, %5, %cst {dimension_numbers = #tpu.dot_dimension_numbers<[1], [0], [0], [1], [0, 0, 1, 1], [], []>} : vector<8x32xbf16>, vector<32x32xbf16>, vector<8x32xf32> -> vector<8x32xf32>
    %c0_7 = arith.constant 0 : index
    %c0_8 = arith.constant 0 : index
    %7 = vector.load %arg4[%c0_7, %c0_8] : memref<1x32xf32, #tpu.memory_space<vmem>>, vector<1x32xf32>
    %8 = vector.broadcast %7 : vector<1x32xf32> to vector<8x32xf32>
    %9 = arith.addf %6, %8 : vector<8x32xf32>
    %10 = arith.truncf %3 : vector<16x32xf32> to vector<16x32xbf16>
    %c0_9 = arith.constant 0 : index
    %c0_10 = arith.constant 0 : index
    %11 = vector.load %arg5[%c0_9, %c0_10] : memref<32x64xbf16, #tpu.memory_space<vmem>>, vector<32x64xbf16>
    %cst_11 = arith.constant dense<0.000000e+00> : vector<16x64xf32>
    %12 = tpu.matmul %10, %11, %cst_11 {dimension_numbers = #tpu.dot_dimension_numbers<[1], [0], [0], [1], [0, 0, 1, 1], [], []>} : vector<16x32xbf16>, vector<32x64xbf16>, vector<16x64xf32> -> vector<16x64xf32>
    %c0_12 = arith.constant 0 : index
    %c0_13 = arith.constant 0 : index
    %13 = vector.load %arg6[%c0_12, %c0_13] : memref<1x64xf32, #tpu.memory_space<vmem>>, vector<1x64xf32>
    %14 = vector.broadcast %13 : vector<1x64xf32> to vector<16x64xf32>
    %15 = arith.addf %12, %14 : vector<16x64xf32>
    %16 = vector.extract_strided_slice %15 {offsets = [0, 0], sizes = [16, 32], strides = [1, 1]} : vector<16x64xf32> to vector<16x32xf32>
    %17 = vector.extract_strided_slice %15 {offsets = [0, 32], sizes = [16, 32], strides = [1, 1]} : vector<16x64xf32> to vector<16x32xf32>
    %18 = arith.truncf %9 : vector<8x32xf32> to vector<8x32xbf16>
    %19 = arith.truncf %16 : vector<16x32xf32> to vector<16x32xbf16>
    %20 = arith.truncf %17 : vector<16x32xf32> to vector<16x32xbf16>
    %21 = vector.extract_strided_slice %18 {offsets = [0, 0], sizes = [8, 8], strides = [1, 1]} : vector<8x32xbf16> to vector<8x8xbf16>
    %22 = vector.extract_strided_slice %19 {offsets = [0, 0], sizes = [16, 8], strides = [1, 1]} : vector<16x32xbf16> to vector<16x8xbf16>
    %23 = vector.extract_strided_slice %20 {offsets = [0, 0], sizes = [16, 8], strides = [1, 1]} : vector<16x32xbf16> to vector<16x8xbf16>
    %cst_14 = arith.constant dense<0.000000e+00> : vector<8x16xf32>
    %24 = tpu.matmul %21, %22, %cst_14 {dimension_numbers = #tpu.dot_dimension_numbers<[1], [1], [0], [0], [0, 0, 1, 0], [], []>} : vector<8x8xbf16>, vector<16x8xbf16>, vector<8x16xf32> -> vector<8x16xf32>
    %cst_15 = arith.constant dense<0xFF800000> : vector<8xf32>
    %25 = vector.multi_reduction <maximumf>, %24, %cst_15 [1] : vector<8x16xf32> to vector<8xf32>
    %26 = vector.shape_cast %25 : vector<8xf32> to vector<8x1xf32>
    %27 = vector.broadcast %26 : vector<8x1xf32> to vector<8x16xf32>
    %28 = arith.subf %24, %27 : vector<8x16xf32>
    %29 = math.exp %28 : vector<8x16xf32>
    %cst_16 = arith.constant dense<0.000000e+00> : vector<8xf32>
    %30 = vector.multi_reduction <add>, %29, %cst_16 [1] : vector<8x16xf32> to vector<8xf32>
    %31 = vector.shape_cast %30 : vector<8xf32> to vector<8x1xf32>
    %cst_17 = arith.constant 1.000000e-30 : f32
    %32 = vector.broadcast %cst_17 : f32 to vector<8x1xf32>
    %33 = arith.maximumf %31, %32 : vector<8x1xf32>
    %34 = tpu.reciprocal %33 {approx = true} : vector<8x1xf32> -> vector<8x1xf32>
    %35 = vector.broadcast %34 : vector<8x1xf32> to vector<8x16xf32>
    %36 = arith.mulf %29, %35 : vector<8x16xf32>
    %37 = arith.truncf %36 : vector<8x16xf32> to vector<8x16xbf16>
    %cst_18 = arith.constant dense<0.000000e+00> : vector<8x8xf32>
    %38 = tpu.matmul %37, %23, %cst_18 {dimension_numbers = #tpu.dot_dimension_numbers<[1], [0], [0], [1], [0, 0, 1, 1], [], []>} : vector<8x16xbf16>, vector<16x8xbf16>, vector<8x8xf32> -> vector<8x8xf32>
    %c0_19 = arith.constant 0 : index
    %c0_20 = arith.constant 0 : index
    %39 = vector.load %arg12[%c0_19, %c0_20] : memref<8x32xf32, #tpu.memory_space<vmem>>, vector<8x8xf32>
    tpu.vector_store %arg12[%c0_19, %c0_20], %38 {strides = array<i32>} : memref<8x32xf32, #tpu.memory_space<vmem>>, vector<8x8xf32>,
    %40 = vector.extract_strided_slice %18 {offsets = [0, 8], sizes = [8, 8], strides = [1, 1]} : vector<8x32xbf16> to vector<8x8xbf16>
    %41 = vector.extract_strided_slice %19 {offsets = [0, 8], sizes = [16, 8], strides = [1, 1]} : vector<16x32xbf16> to vector<16x8xbf16>
    %42 = vector.extract_strided_slice %20 {offsets = [0, 8], sizes = [16, 8], strides = [1, 1]} : vector<16x32xbf16> to vector<16x8xbf16>
    %cst_21 = arith.constant dense<0.000000e+00> : vector<8x16xf32>
    %43 = tpu.matmul %40, %41, %cst_21 {dimension_numbers = #tpu.dot_dimension_numbers<[1], [1], [0], [0], [0, 0, 1, 0], [], []>} : vector<8x8xbf16>, vector<16x8xbf16>, vector<8x16xf32> -> vector<8x16xf32>
    %cst_22 = arith.constant dense<0xFF800000> : vector<8xf32>
    %44 = vector.multi_reduction <maximumf>, %43, %cst_22 [1] : vector<8x16xf32> to vector<8xf32>
    %45 = vector.shape_cast %44 : vector<8xf32> to vector<8x1xf32>
    %46 = vector.broadcast %45 : vector<8x1xf32> to vector<8x16xf32>
    %47 = arith.subf %43, %46 : vector<8x16xf32>
    %48 = math.exp %47 : vector<8x16xf32>
    %cst_23 = arith.constant dense<0.000000e+00> : vector<8xf32>
    %49 = vector.multi_reduction <add>, %48, %cst_23 [1] : vector<8x16xf32> to vector<8xf32>
    %50 = vector.shape_cast %49 : vector<8xf32> to vector<8x1xf32>
    %cst_24 = arith.constant 1.000000e-30 : f32
    %51 = vector.broadcast %cst_24 : f32 to vector<8x1xf32>
    %52 = arith.maximumf %50, %51 : vector<8x1xf32>
    %53 = tpu.reciprocal %52 {approx = true} : vector<8x1xf32> -> vector<8x1xf32>
    %54 = vector.broadcast %53 : vector<8x1xf32> to vector<8x16xf32>
    %55 = arith.mulf %48, %54 : vector<8x16xf32>
    %56 = arith.truncf %55 : vector<8x16xf32> to vector<8x16xbf16>
    %cst_25 = arith.constant dense<0.000000e+00> : vector<8x8xf32>
    %57 = tpu.matmul %56, %42, %cst_25 {dimension_numbers = #tpu.dot_dimension_numbers<[1], [0], [0], [1], [0, 0, 1, 1], [], []>} : vector<8x16xbf16>, vector<16x8xbf16>, vector<8x8xf32> -> vector<8x8xf32>
    %c0_26 = arith.constant 0 : index
    %c8 = arith.constant 8 : index
    %58 = vector.load %arg12[%c0_26, %c8] : memref<8x32xf32, #tpu.memory_space<vmem>>, vector<8x8xf32>
    tpu.vector_store %arg12[%c0_26, %c8], %57 {strides = array<i32>} : memref<8x32xf32, #tpu.memory_space<vmem>>, vector<8x8xf32>,
    %59 = vector.extract_strided_slice %18 {offsets = [0, 16], sizes = [8, 8], strides = [1, 1]} : vector<8x32xbf16> to vector<8x8xbf16>
    %60 = vector.extract_strided_slice %19 {offsets = [0, 16], sizes = [16, 8], strides = [1, 1]} : vector<16x32xbf16> to vector<16x8xbf16>
    %61 = vector.extract_strided_slice %20 {offsets = [0, 16], sizes = [16, 8], strides = [1, 1]} : vector<16x32xbf16> to vector<16x8xbf16>
    %cst_27 = arith.constant dense<0.000000e+00> : vector<8x16xf32>
    %62 = tpu.matmul %59, %60, %cst_27 {dimension_numbers = #tpu.dot_dimension_numbers<[1], [1], [0], [0], [0, 0, 1, 0], [], []>} : vector<8x8xbf16>, vector<16x8xbf16>, vector<8x16xf32> -> vector<8x16xf32>
    %cst_28 = arith.constant dense<0xFF800000> : vector<8xf32>
    %63 = vector.multi_reduction <maximumf>, %62, %cst_28 [1] : vector<8x16xf32> to vector<8xf32>
    %64 = vector.shape_cast %63 : vector<8xf32> to vector<8x1xf32>
    %65 = vector.broadcast %64 : vector<8x1xf32> to vector<8x16xf32>
    %66 = arith.subf %62, %65 : vector<8x16xf32>
    %67 = math.exp %66 : vector<8x16xf32>
    %cst_29 = arith.constant dense<0.000000e+00> : vector<8xf32>
    %68 = vector.multi_reduction <add>, %67, %cst_29 [1] : vector<8x16xf32> to vector<8xf32>
    %69 = vector.shape_cast %68 : vector<8xf32> to vector<8x1xf32>
    %cst_30 = arith.constant 1.000000e-30 : f32
    %70 = vector.broadcast %cst_30 : f32 to vector<8x1xf32>
    %71 = arith.maximumf %69, %70 : vector<8x1xf32>
    %72 = tpu.reciprocal %71 {approx = true} : vector<8x1xf32> -> vector<8x1xf32>
    %73 = vector.broadcast %72 : vector<8x1xf32> to vector<8x16xf32>
    %74 = arith.mulf %67, %73 : vector<8x16xf32>
    %75 = arith.truncf %74 : vector<8x16xf32> to vector<8x16xbf16>
    %cst_31 = arith.constant dense<0.000000e+00> : vector<8x8xf32>
    %76 = tpu.matmul %75, %61, %cst_31 {dimension_numbers = #tpu.dot_dimension_numbers<[1], [0], [0], [1], [0, 0, 1, 1], [], []>} : vector<8x16xbf16>, vector<16x8xbf16>, vector<8x8xf32> -> vector<8x8xf32>
    %c0_32 = arith.constant 0 : index
    %c16 = arith.constant 16 : index
    %77 = vector.load %arg12[%c0_32, %c16] : memref<8x32xf32, #tpu.memory_space<vmem>>, vector<8x8xf32>
    tpu.vector_store %arg12[%c0_32, %c16], %76 {strides = array<i32>} : memref<8x32xf32, #tpu.memory_space<vmem>>, vector<8x8xf32>,
    %78 = vector.extract_strided_slice %18 {offsets = [0, 24], sizes = [8, 8], strides = [1, 1]} : vector<8x32xbf16> to vector<8x8xbf16>
    %79 = vector.extract_strided_slice %19 {offsets = [0, 24], sizes = [16, 8], strides = [1, 1]} : vector<16x32xbf16> to vector<16x8xbf16>
    %80 = vector.extract_strided_slice %20 {offsets = [0, 24], sizes = [16, 8], strides = [1, 1]} : vector<16x32xbf16> to vector<16x8xbf16>
    %cst_33 = arith.constant dense<0.000000e+00> : vector<8x16xf32>
    %81 = tpu.matmul %78, %79, %cst_33 {dimension_numbers = #tpu.dot_dimension_numbers<[1], [1], [0], [0], [0, 0, 1, 0], [], []>} : vector<8x8xbf16>, vector<16x8xbf16>, vector<8x16xf32> -> vector<8x16xf32>
    %cst_34 = arith.constant dense<0xFF800000> : vector<8xf32>
    %82 = vector.multi_reduction <maximumf>, %81, %cst_34 [1] : vector<8x16xf32> to vector<8xf32>
    %83 = vector.shape_cast %82 : vector<8xf32> to vector<8x1xf32>
    %84 = vector.broadcast %83 : vector<8x1xf32> to vector<8x16xf32>
    %85 = arith.subf %81, %84 : vector<8x16xf32>
    %86 = math.exp %85 : vector<8x16xf32>
    %cst_35 = arith.constant dense<0.000000e+00> : vector<8xf32>
    %87 = vector.multi_reduction <add>, %86, %cst_35 [1] : vector<8x16xf32> to vector<8xf32>
    %88 = vector.shape_cast %87 : vector<8xf32> to vector<8x1xf32>
    %cst_36 = arith.constant 1.000000e-30 : f32
    %89 = vector.broadcast %cst_36 : f32 to vector<8x1xf32>
    %90 = arith.maximumf %88, %89 : vector<8x1xf32>
    %91 = tpu.reciprocal %90 {approx = true} : vector<8x1xf32> -> vector<8x1xf32>
    %92 = vector.broadcast %91 : vector<8x1xf32> to vector<8x16xf32>
    %93 = arith.mulf %86, %92 : vector<8x16xf32>
    %94 = arith.truncf %93 : vector<8x16xf32> to vector<8x16xbf16>
    %cst_37 = arith.constant dense<0.000000e+00> : vector<8x8xf32>
    %95 = tpu.matmul %94, %80, %cst_37 {dimension_numbers = #tpu.dot_dimension_numbers<[1], [0], [0], [1], [0, 0, 1, 1], [], []>} : vector<8x16xbf16>, vector<16x8xbf16>, vector<8x8xf32> -> vector<8x8xf32>
    %c0_38 = arith.constant 0 : index
    %c24 = arith.constant 24 : index
    %96 = vector.load %arg12[%c0_38, %c24] : memref<8x32xf32, #tpu.memory_space<vmem>>, vector<8x8xf32>
    tpu.vector_store %arg12[%c0_38, %c24], %95 {strides = array<i32>} : memref<8x32xf32, #tpu.memory_space<vmem>>, vector<8x8xf32>,
    %c0_39 = arith.constant 0 : index
    %c0_40 = arith.constant 0 : index
    %97 = vector.load %arg12[%c0_39, %c0_40] : memref<8x32xf32, #tpu.memory_space<vmem>>, vector<8x32xf32>
    %c0_41 = arith.constant 0 : index
    %c0_42 = arith.constant 0 : index
    %98 = vector.load %arg7[%c0_41, %c0_42] : memref<32x32xbf16, #tpu.memory_space<vmem>>, vector<32x32xbf16>
    %c0_43 = arith.constant 0 : index
    %c0_44 = arith.constant 0 : index
    %99 = vector.load %arg8[%c0_43, %c0_44] : memref<1x32xf32, #tpu.memory_space<vmem>>, vector<1x32xf32>
    %c0_45 = arith.constant 0 : index
    %c0_46 = arith.constant 0 : index
    %100 = vector.load %arg9[%c0_45, %c0_46] : memref<1x32xf32, #tpu.memory_space<vmem>>, vector<1x32xf32>
    %c0_47 = arith.constant 0 : index
    %c0_48 = arith.constant 0 : index
    %101 = vector.load %arg10[%c0_47, %c0_48] : memref<1x32xf32, #tpu.memory_space<vmem>>, vector<1x32xf32>
    %102 = arith.truncf %97 : vector<8x32xf32> to vector<8x32xbf16>
    %cst_49 = arith.constant dense<0.000000e+00> : vector<8x32xf32>
    %103 = tpu.matmul %102, %98, %cst_49 {dimension_numbers = #tpu.dot_dimension_numbers<[1], [0], [0], [1], [0, 0, 1, 1], [], []>} : vector<8x32xbf16>, vector<32x32xbf16>, vector<8x32xf32> -> vector<8x32xf32>
    %104 = vector.broadcast %99 : vector<1x32xf32> to vector<8x32xf32>
    %105 = arith.addf %103, %104 : vector<8x32xf32>
    %106 = arith.addf %1, %105 : vector<8x32xf32>
    %cst_50 = arith.constant dense<0.000000e+00> : vector<8xf32>
    %107 = vector.multi_reduction <add>, %106, %cst_50 [1] : vector<8x32xf32> to vector<8xf32>
    %108 = vector.shape_cast %107 : vector<8xf32> to vector<8x1xf32>
    %cst_51 = arith.constant 3.200000e+01 : f32
    %109 = vector.broadcast %cst_51 : f32 to vector<8x1xf32>
    %110 = arith.divf %108, %109 : vector<8x1xf32>
    %111 = vector.broadcast %110 : vector<8x1xf32> to vector<8x32xf32>
    %112 = arith.subf %106, %111 : vector<8x32xf32>
    %113 = arith.mulf %112, %112 : vector<8x32xf32>
    %cst_52 = arith.constant dense<0.000000e+00> : vector<8xf32>
    %114 = vector.multi_reduction <add>, %113, %cst_52 [1] : vector<8x32xf32> to vector<8xf32>
    %115 = vector.shape_cast %114 : vector<8xf32> to vector<8x1xf32>
    %cst_53 = arith.constant 3.200000e+01 : f32
    %116 = vector.broadcast %cst_53 : f32 to vector<8x1xf32>
    %117 = arith.divf %115, %116 : vector<8x1xf32>
    %cst_54 = arith.constant 9.99999974E-6 : f32
    %118 = vector.broadcast %cst_54 : f32 to vector<8x1xf32>
    %119 = arith.addf %117, %118 : vector<8x1xf32>
    %120 = math.rsqrt %119 : vector<8x1xf32>
    %121 = vector.broadcast %120 : vector<8x1xf32> to vector<8x32xf32>
    %122 = arith.mulf %112, %121 : vector<8x32xf32>
    %123 = vector.broadcast %100 : vector<1x32xf32> to vector<8x32xf32>
    %124 = arith.mulf %122, %123 : vector<8x32xf32>
    %125 = vector.broadcast %101 : vector<1x32xf32> to vector<8x32xf32>
    %126 = arith.addf %124, %125 : vector<8x32xf32>
    %c0_55 = arith.constant 0 : index
    %c0_56 = arith.constant 0 : index
    %c0_57 = arith.constant 0 : index
    %127 = vector.load %arg11[%c0_55, %c0_56, %c0_57] : memref<1x8x32xf32, #tpu.memory_space<vmem>>, vector<1x8x32xf32>
    %128 = vector.shape_cast %127 : vector<1x8x32xf32> to vector<8x32xf32>
    %129 = vector.shape_cast %126 : vector<8x32xf32> to vector<1x8x32xf32>
    tpu.vector_store %arg11[%c0_55, %c0_56, %c0_57], %129 {strides = array<i32>} : memref<1x8x32xf32, #tpu.memory_space<vmem>>, vector<1x8x32xf32>,
    return
  }
  func.func @transform_0(%arg0: i32) -> (i32, i32, i32) {
    %c0_i32 = arith.constant 0 : i32
    %c0_i32_0 = arith.constant 0 : i32
    %c0_i32_1 = arith.constant 0 : i32
    return %arg0, %c0_i32, %c0_i32_0 : i32, i32, i32
  }
  func.func @transform_1(%arg0: i32) -> (i32, i32, i32) {
    %c0_i32 = arith.constant 0 : i32
    %c0_i32_0 = arith.constant 0 : i32
    %c0_i32_1 = arith.constant 0 : i32
    return %arg0, %c0_i32, %c0_i32_0 : i32, i32, i32
  }
  func.func @transform_2(%arg0: i32) -> (i32, i32) {
    %c0_i32 = arith.constant 0 : i32
    %c0_i32_0 = arith.constant 0 : i32
    %c0_i32_1 = arith.constant 0 : i32
    return %c0_i32, %c0_i32_0 : i32, i32
  }
  func.func @transform_3(%arg0: i32) -> (i32, i32) {
    %c0_i32 = arith.constant 0 : i32
    %c0_i32_0 = arith.constant 0 : i32
    %c0_i32_1 = arith.constant 0 : i32
    return %c0_i32, %c0_i32_0 : i32, i32
  }
  func.func @transform_4(%arg0: i32) -> (i32, i32) {
    %c0_i32 = arith.constant 0 : i32
    %c0_i32_0 = arith.constant 0 : i32
    %c0_i32_1 = arith.constant 0 : i32
    return %c0_i32, %c0_i32_0 : i32, i32
  }
  func.func @transform_5(%arg0: i32) -> (i32, i32) {
    %c0_i32 = arith.constant 0 : i32
    %c0_i32_0 = arith.constant 0 : i32
    %c0_i32_1 = arith.constant 0 : i32
    return %c0_i32, %c0_i32_0 : i32, i32
  }
  func.func @transform_6(%arg0: i32) -> (i32, i32) {
    %c0_i32 = arith.constant 0 : i32
    %c0_i32_0 = arith.constant 0 : i32
    %c0_i32_1 = arith.constant 0 : i32
    return %c0_i32, %c0_i32_0 : i32, i32
  }
  func.func @transform_7(%arg0: i32) -> (i32, i32) {
    %c0_i32 = arith.constant 0 : i32
    %c0_i32_0 = arith.constant 0 : i32
    %c0_i32_1 = arith.constant 0 : i32
    return %c0_i32, %c0_i32_0 : i32, i32
  }
  func.func @transform_8(%arg0: i32) -> (i32, i32) {
    %c0_i32 = arith.constant 0 : i32
    %c0_i32_0 = arith.constant 0 : i32
    %c0_i32_1 = arith.constant 0 : i32
    return %c0_i32, %c0_i32_0 : i32, i32
  }
  func.func @transform_9(%arg0: i32) -> (i32, i32) {
    %c0_i32 = arith.constant 0 : i32
    %c0_i32_0 = arith.constant 0 : i32
    %c0_i32_1 = arith.constant 0 : i32
    return %c0_i32, %c0_i32_0 : i32, i32
  }
  func.func @transform_10(%arg0: i32) -> (i32, i32, i32) {
    %c0_i32 = arith.constant 0 : i32
    %c0_i32_0 = arith.constant 0 : i32
    %c0_i32_1 = arith.constant 0 : i32
    return %arg0, %c0_i32, %c0_i32_0 : i32, i32, i32
  }
}

module attributes {stable_mosaic.version = 11 : i64} {
  func.func @_self_attn_block_kernel(%arg0: i32, %arg1: memref<1x8x32xf32, #tpu.memory_space<vmem>>, %arg2: memref<32x96xbf16, #tpu.memory_space<vmem>>, %arg3: memref<1x96xf32, #tpu.memory_space<vmem>>, %arg4: memref<32x32xbf16, #tpu.memory_space<vmem>>, %arg5: memref<1x32xf32, #tpu.memory_space<vmem>>, %arg6: memref<1x32xf32, #tpu.memory_space<vmem>>, %arg7: memref<1x32xf32, #tpu.memory_space<vmem>>, %arg8: memref<8x8xf32, #tpu.memory_space<vmem>>, %arg9: memref<1x8x32xf32, #tpu.memory_space<vmem>>, %arg10: memref<8x32xf32, #tpu.memory_space<vmem>>) attributes {dimension_semantics = [#tpu.dimension_semantics<parallel>], iteration_bounds = array<i64: 2>, scalar_prefetch = 0 : i64, scratch_operands = 1 : i64, tpu.core_type = #tpu.core_type<tc>, window_params = [{transform_indices = @transform_0, window_bounds = array<i64: 1, 8, 32>}, {pipeline_mode = #tpu.pipeline_mode<synchronous>, transform_indices = @transform_1, window_bounds = array<i64: 32, 96>}, {pipeline_mode = #tpu.pipeline_mode<synchronous>, transform_indices = @transform_2, window_bounds = array<i64: 1, 96>}, {pipeline_mode = #tpu.pipeline_mode<synchronous>, transform_indices = @transform_3, window_bounds = array<i64: 32, 32>}, {pipeline_mode = #tpu.pipeline_mode<synchronous>, transform_indices = @transform_4, window_bounds = array<i64: 1, 32>}, {pipeline_mode = #tpu.pipeline_mode<synchronous>, transform_indices = @transform_5, window_bounds = array<i64: 1, 32>}, {pipeline_mode = #tpu.pipeline_mode<synchronous>, transform_indices = @transform_6, window_bounds = array<i64: 1, 32>}, {pipeline_mode = #tpu.pipeline_mode<synchronous>, transform_indices = @transform_7, window_bounds = array<i64: 8, 8>}, {transform_indices = @transform_8, window_bounds = array<i64: 1, 8, 32>}]} {
    %c0 = arith.constant 0 : index
    %c0_0 = arith.constant 0 : index
    %0 = vector.load %arg8[%c0, %c0_0] : memref<8x8xf32, #tpu.memory_space<vmem>>, vector<8x8xf32>
    %c0_1 = arith.constant 0 : index
    %c0_2 = arith.constant 0 : index
    %c0_3 = arith.constant 0 : index
    %1 = vector.load %arg1[%c0_1, %c0_2, %c0_3] : memref<1x8x32xf32, #tpu.memory_space<vmem>>, vector<1x8x32xf32>
    %2 = vector.shape_cast %1 : vector<1x8x32xf32> to vector<8x32xf32>
    %3 = arith.truncf %2 : vector<8x32xf32> to vector<8x32xbf16>
    %c0_4 = arith.constant 0 : index
    %c0_5 = arith.constant 0 : index
    %4 = vector.load %arg2[%c0_4, %c0_5] : memref<32x96xbf16, #tpu.memory_space<vmem>>, vector<32x96xbf16>
    %cst = arith.constant dense<0.000000e+00> : vector<8x96xf32>
    %5 = tpu.matmul %3, %4, %cst {dimension_numbers = #tpu.dot_dimension_numbers<[1], [0], [0], [1], [0, 0, 1, 1], [], []>} : vector<8x32xbf16>, vector<32x96xbf16>, vector<8x96xf32> -> vector<8x96xf32>
    %c0_6 = arith.constant 0 : index
    %c0_7 = arith.constant 0 : index
    %6 = vector.load %arg3[%c0_6, %c0_7] : memref<1x96xf32, #tpu.memory_space<vmem>>, vector<1x96xf32>
    %7 = vector.broadcast %6 : vector<1x96xf32> to vector<8x96xf32>
    %8 = arith.addf %5, %7 : vector<8x96xf32>
    %9 = vector.extract_strided_slice %8 {offsets = [0, 0], sizes = [8, 32], strides = [1, 1]} : vector<8x96xf32> to vector<8x32xf32>
    %10 = vector.extract_strided_slice %8 {offsets = [0, 32], sizes = [8, 32], strides = [1, 1]} : vector<8x96xf32> to vector<8x32xf32>
    %11 = vector.extract_strided_slice %8 {offsets = [0, 64], sizes = [8, 32], strides = [1, 1]} : vector<8x96xf32> to vector<8x32xf32>
    %12 = arith.truncf %9 : vector<8x32xf32> to vector<8x32xbf16>
    %13 = arith.truncf %10 : vector<8x32xf32> to vector<8x32xbf16>
    %14 = arith.truncf %11 : vector<8x32xf32> to vector<8x32xbf16>
    %15 = vector.extract_strided_slice %12 {offsets = [0, 0], sizes = [8, 8], strides = [1, 1]} : vector<8x32xbf16> to vector<8x8xbf16>
    %16 = vector.extract_strided_slice %13 {offsets = [0, 0], sizes = [8, 8], strides = [1, 1]} : vector<8x32xbf16> to vector<8x8xbf16>
    %17 = vector.extract_strided_slice %14 {offsets = [0, 0], sizes = [8, 8], strides = [1, 1]} : vector<8x32xbf16> to vector<8x8xbf16>
    %cst_8 = arith.constant dense<0.000000e+00> : vector<8x8xf32>
    %18 = tpu.matmul %15, %16, %cst_8 {dimension_numbers = #tpu.dot_dimension_numbers<[1], [1], [0], [0], [0, 0, 1, 0], [], []>} : vector<8x8xbf16>, vector<8x8xbf16>, vector<8x8xf32> -> vector<8x8xf32>
    %19 = arith.addf %18, %0 : vector<8x8xf32>
    %cst_9 = arith.constant dense<0xFF800000> : vector<8xf32>
    %20 = vector.multi_reduction <maximumf>, %19, %cst_9 [1] : vector<8x8xf32> to vector<8xf32>
    %21 = vector.shape_cast %20 : vector<8xf32> to vector<8x1xf32>
    %22 = vector.broadcast %21 : vector<8x1xf32> to vector<8x8xf32>
    %23 = arith.subf %19, %22 : vector<8x8xf32>
    %24 = math.exp %23 : vector<8x8xf32>
    %cst_10 = arith.constant dense<0.000000e+00> : vector<8xf32>
    %25 = vector.multi_reduction <add>, %24, %cst_10 [1] : vector<8x8xf32> to vector<8xf32>
    %26 = vector.shape_cast %25 : vector<8xf32> to vector<8x1xf32>
    %cst_11 = arith.constant 1.000000e-30 : f32
    %27 = vector.broadcast %cst_11 : f32 to vector<8x1xf32>
    %28 = arith.maximumf %26, %27 : vector<8x1xf32>
    %29 = tpu.reciprocal %28 {approx = true} : vector<8x1xf32> -> vector<8x1xf32>
    %30 = vector.broadcast %29 : vector<8x1xf32> to vector<8x8xf32>
    %31 = arith.mulf %24, %30 : vector<8x8xf32>
    %32 = arith.truncf %31 : vector<8x8xf32> to vector<8x8xbf16>
    %cst_12 = arith.constant dense<0.000000e+00> : vector<8x8xf32>
    %33 = tpu.matmul %32, %17, %cst_12 {dimension_numbers = #tpu.dot_dimension_numbers<[1], [0], [0], [1], [0, 0, 1, 1], [], []>} : vector<8x8xbf16>, vector<8x8xbf16>, vector<8x8xf32> -> vector<8x8xf32>
    %c0_13 = arith.constant 0 : index
    %c0_14 = arith.constant 0 : index
    %34 = vector.load %arg10[%c0_13, %c0_14] : memref<8x32xf32, #tpu.memory_space<vmem>>, vector<8x8xf32>
    tpu.vector_store %arg10[%c0_13, %c0_14], %33 {strides = array<i32>} : memref<8x32xf32, #tpu.memory_space<vmem>>, vector<8x8xf32>,
    %35 = vector.extract_strided_slice %12 {offsets = [0, 8], sizes = [8, 8], strides = [1, 1]} : vector<8x32xbf16> to vector<8x8xbf16>
    %36 = vector.extract_strided_slice %13 {offsets = [0, 8], sizes = [8, 8], strides = [1, 1]} : vector<8x32xbf16> to vector<8x8xbf16>
    %37 = vector.extract_strided_slice %14 {offsets = [0, 8], sizes = [8, 8], strides = [1, 1]} : vector<8x32xbf16> to vector<8x8xbf16>
    %cst_15 = arith.constant dense<0.000000e+00> : vector<8x8xf32>
    %38 = tpu.matmul %35, %36, %cst_15 {dimension_numbers = #tpu.dot_dimension_numbers<[1], [1], [0], [0], [0, 0, 1, 0], [], []>} : vector<8x8xbf16>, vector<8x8xbf16>, vector<8x8xf32> -> vector<8x8xf32>
    %39 = arith.addf %38, %0 : vector<8x8xf32>
    %cst_16 = arith.constant dense<0xFF800000> : vector<8xf32>
    %40 = vector.multi_reduction <maximumf>, %39, %cst_16 [1] : vector<8x8xf32> to vector<8xf32>
    %41 = vector.shape_cast %40 : vector<8xf32> to vector<8x1xf32>
    %42 = vector.broadcast %41 : vector<8x1xf32> to vector<8x8xf32>
    %43 = arith.subf %39, %42 : vector<8x8xf32>
    %44 = math.exp %43 : vector<8x8xf32>
    %cst_17 = arith.constant dense<0.000000e+00> : vector<8xf32>
    %45 = vector.multi_reduction <add>, %44, %cst_17 [1] : vector<8x8xf32> to vector<8xf32>
    %46 = vector.shape_cast %45 : vector<8xf32> to vector<8x1xf32>
    %cst_18 = arith.constant 1.000000e-30 : f32
    %47 = vector.broadcast %cst_18 : f32 to vector<8x1xf32>
    %48 = arith.maximumf %46, %47 : vector<8x1xf32>
    %49 = tpu.reciprocal %48 {approx = true} : vector<8x1xf32> -> vector<8x1xf32>
    %50 = vector.broadcast %49 : vector<8x1xf32> to vector<8x8xf32>
    %51 = arith.mulf %44, %50 : vector<8x8xf32>
    %52 = arith.truncf %51 : vector<8x8xf32> to vector<8x8xbf16>
    %cst_19 = arith.constant dense<0.000000e+00> : vector<8x8xf32>
    %53 = tpu.matmul %52, %37, %cst_19 {dimension_numbers = #tpu.dot_dimension_numbers<[1], [0], [0], [1], [0, 0, 1, 1], [], []>} : vector<8x8xbf16>, vector<8x8xbf16>, vector<8x8xf32> -> vector<8x8xf32>
    %c0_20 = arith.constant 0 : index
    %c8 = arith.constant 8 : index
    %54 = vector.load %arg10[%c0_20, %c8] : memref<8x32xf32, #tpu.memory_space<vmem>>, vector<8x8xf32>
    tpu.vector_store %arg10[%c0_20, %c8], %53 {strides = array<i32>} : memref<8x32xf32, #tpu.memory_space<vmem>>, vector<8x8xf32>,
    %55 = vector.extract_strided_slice %12 {offsets = [0, 16], sizes = [8, 8], strides = [1, 1]} : vector<8x32xbf16> to vector<8x8xbf16>
    %56 = vector.extract_strided_slice %13 {offsets = [0, 16], sizes = [8, 8], strides = [1, 1]} : vector<8x32xbf16> to vector<8x8xbf16>
    %57 = vector.extract_strided_slice %14 {offsets = [0, 16], sizes = [8, 8], strides = [1, 1]} : vector<8x32xbf16> to vector<8x8xbf16>
    %cst_21 = arith.constant dense<0.000000e+00> : vector<8x8xf32>
    %58 = tpu.matmul %55, %56, %cst_21 {dimension_numbers = #tpu.dot_dimension_numbers<[1], [1], [0], [0], [0, 0, 1, 0], [], []>} : vector<8x8xbf16>, vector<8x8xbf16>, vector<8x8xf32> -> vector<8x8xf32>
    %59 = arith.addf %58, %0 : vector<8x8xf32>
    %cst_22 = arith.constant dense<0xFF800000> : vector<8xf32>
    %60 = vector.multi_reduction <maximumf>, %59, %cst_22 [1] : vector<8x8xf32> to vector<8xf32>
    %61 = vector.shape_cast %60 : vector<8xf32> to vector<8x1xf32>
    %62 = vector.broadcast %61 : vector<8x1xf32> to vector<8x8xf32>
    %63 = arith.subf %59, %62 : vector<8x8xf32>
    %64 = math.exp %63 : vector<8x8xf32>
    %cst_23 = arith.constant dense<0.000000e+00> : vector<8xf32>
    %65 = vector.multi_reduction <add>, %64, %cst_23 [1] : vector<8x8xf32> to vector<8xf32>
    %66 = vector.shape_cast %65 : vector<8xf32> to vector<8x1xf32>
    %cst_24 = arith.constant 1.000000e-30 : f32
    %67 = vector.broadcast %cst_24 : f32 to vector<8x1xf32>
    %68 = arith.maximumf %66, %67 : vector<8x1xf32>
    %69 = tpu.reciprocal %68 {approx = true} : vector<8x1xf32> -> vector<8x1xf32>
    %70 = vector.broadcast %69 : vector<8x1xf32> to vector<8x8xf32>
    %71 = arith.mulf %64, %70 : vector<8x8xf32>
    %72 = arith.truncf %71 : vector<8x8xf32> to vector<8x8xbf16>
    %cst_25 = arith.constant dense<0.000000e+00> : vector<8x8xf32>
    %73 = tpu.matmul %72, %57, %cst_25 {dimension_numbers = #tpu.dot_dimension_numbers<[1], [0], [0], [1], [0, 0, 1, 1], [], []>} : vector<8x8xbf16>, vector<8x8xbf16>, vector<8x8xf32> -> vector<8x8xf32>
    %c0_26 = arith.constant 0 : index
    %c16 = arith.constant 16 : index
    %74 = vector.load %arg10[%c0_26, %c16] : memref<8x32xf32, #tpu.memory_space<vmem>>, vector<8x8xf32>
    tpu.vector_store %arg10[%c0_26, %c16], %73 {strides = array<i32>} : memref<8x32xf32, #tpu.memory_space<vmem>>, vector<8x8xf32>,
    %75 = vector.extract_strided_slice %12 {offsets = [0, 24], sizes = [8, 8], strides = [1, 1]} : vector<8x32xbf16> to vector<8x8xbf16>
    %76 = vector.extract_strided_slice %13 {offsets = [0, 24], sizes = [8, 8], strides = [1, 1]} : vector<8x32xbf16> to vector<8x8xbf16>
    %77 = vector.extract_strided_slice %14 {offsets = [0, 24], sizes = [8, 8], strides = [1, 1]} : vector<8x32xbf16> to vector<8x8xbf16>
    %cst_27 = arith.constant dense<0.000000e+00> : vector<8x8xf32>
    %78 = tpu.matmul %75, %76, %cst_27 {dimension_numbers = #tpu.dot_dimension_numbers<[1], [1], [0], [0], [0, 0, 1, 0], [], []>} : vector<8x8xbf16>, vector<8x8xbf16>, vector<8x8xf32> -> vector<8x8xf32>
    %79 = arith.addf %78, %0 : vector<8x8xf32>
    %cst_28 = arith.constant dense<0xFF800000> : vector<8xf32>
    %80 = vector.multi_reduction <maximumf>, %79, %cst_28 [1] : vector<8x8xf32> to vector<8xf32>
    %81 = vector.shape_cast %80 : vector<8xf32> to vector<8x1xf32>
    %82 = vector.broadcast %81 : vector<8x1xf32> to vector<8x8xf32>
    %83 = arith.subf %79, %82 : vector<8x8xf32>
    %84 = math.exp %83 : vector<8x8xf32>
    %cst_29 = arith.constant dense<0.000000e+00> : vector<8xf32>
    %85 = vector.multi_reduction <add>, %84, %cst_29 [1] : vector<8x8xf32> to vector<8xf32>
    %86 = vector.shape_cast %85 : vector<8xf32> to vector<8x1xf32>
    %cst_30 = arith.constant 1.000000e-30 : f32
    %87 = vector.broadcast %cst_30 : f32 to vector<8x1xf32>
    %88 = arith.maximumf %86, %87 : vector<8x1xf32>
    %89 = tpu.reciprocal %88 {approx = true} : vector<8x1xf32> -> vector<8x1xf32>
    %90 = vector.broadcast %89 : vector<8x1xf32> to vector<8x8xf32>
    %91 = arith.mulf %84, %90 : vector<8x8xf32>
    %92 = arith.truncf %91 : vector<8x8xf32> to vector<8x8xbf16>
    %cst_31 = arith.constant dense<0.000000e+00> : vector<8x8xf32>
    %93 = tpu.matmul %92, %77, %cst_31 {dimension_numbers = #tpu.dot_dimension_numbers<[1], [0], [0], [1], [0, 0, 1, 1], [], []>} : vector<8x8xbf16>, vector<8x8xbf16>, vector<8x8xf32> -> vector<8x8xf32>
    %c0_32 = arith.constant 0 : index
    %c24 = arith.constant 24 : index
    %94 = vector.load %arg10[%c0_32, %c24] : memref<8x32xf32, #tpu.memory_space<vmem>>, vector<8x8xf32>
    tpu.vector_store %arg10[%c0_32, %c24], %93 {strides = array<i32>} : memref<8x32xf32, #tpu.memory_space<vmem>>, vector<8x8xf32>,
    %c0_33 = arith.constant 0 : index
    %c0_34 = arith.constant 0 : index
    %95 = vector.load %arg10[%c0_33, %c0_34] : memref<8x32xf32, #tpu.memory_space<vmem>>, vector<8x32xf32>
    %c0_35 = arith.constant 0 : index
    %c0_36 = arith.constant 0 : index
    %96 = vector.load %arg4[%c0_35, %c0_36] : memref<32x32xbf16, #tpu.memory_space<vmem>>, vector<32x32xbf16>
    %c0_37 = arith.constant 0 : index
    %c0_38 = arith.constant 0 : index
    %97 = vector.load %arg5[%c0_37, %c0_38] : memref<1x32xf32, #tpu.memory_space<vmem>>, vector<1x32xf32>
    %c0_39 = arith.constant 0 : index
    %c0_40 = arith.constant 0 : index
    %98 = vector.load %arg6[%c0_39, %c0_40] : memref<1x32xf32, #tpu.memory_space<vmem>>, vector<1x32xf32>
    %c0_41 = arith.constant 0 : index
    %c0_42 = arith.constant 0 : index
    %99 = vector.load %arg7[%c0_41, %c0_42] : memref<1x32xf32, #tpu.memory_space<vmem>>, vector<1x32xf32>
    %100 = arith.truncf %95 : vector<8x32xf32> to vector<8x32xbf16>
    %cst_43 = arith.constant dense<0.000000e+00> : vector<8x32xf32>
    %101 = tpu.matmul %100, %96, %cst_43 {dimension_numbers = #tpu.dot_dimension_numbers<[1], [0], [0], [1], [0, 0, 1, 1], [], []>} : vector<8x32xbf16>, vector<32x32xbf16>, vector<8x32xf32> -> vector<8x32xf32>
    %102 = vector.broadcast %97 : vector<1x32xf32> to vector<8x32xf32>
    %103 = arith.addf %101, %102 : vector<8x32xf32>
    %104 = arith.addf %2, %103 : vector<8x32xf32>
    %cst_44 = arith.constant dense<0.000000e+00> : vector<8xf32>
    %105 = vector.multi_reduction <add>, %104, %cst_44 [1] : vector<8x32xf32> to vector<8xf32>
    %106 = vector.shape_cast %105 : vector<8xf32> to vector<8x1xf32>
    %cst_45 = arith.constant 3.200000e+01 : f32
    %107 = vector.broadcast %cst_45 : f32 to vector<8x1xf32>
    %108 = arith.divf %106, %107 : vector<8x1xf32>
    %109 = vector.broadcast %108 : vector<8x1xf32> to vector<8x32xf32>
    %110 = arith.subf %104, %109 : vector<8x32xf32>
    %111 = arith.mulf %110, %110 : vector<8x32xf32>
    %cst_46 = arith.constant dense<0.000000e+00> : vector<8xf32>
    %112 = vector.multi_reduction <add>, %111, %cst_46 [1] : vector<8x32xf32> to vector<8xf32>
    %113 = vector.shape_cast %112 : vector<8xf32> to vector<8x1xf32>
    %cst_47 = arith.constant 3.200000e+01 : f32
    %114 = vector.broadcast %cst_47 : f32 to vector<8x1xf32>
    %115 = arith.divf %113, %114 : vector<8x1xf32>
    %cst_48 = arith.constant 9.99999974E-6 : f32
    %116 = vector.broadcast %cst_48 : f32 to vector<8x1xf32>
    %117 = arith.addf %115, %116 : vector<8x1xf32>
    %118 = math.rsqrt %117 : vector<8x1xf32>
    %119 = vector.broadcast %118 : vector<8x1xf32> to vector<8x32xf32>
    %120 = arith.mulf %110, %119 : vector<8x32xf32>
    %121 = vector.broadcast %98 : vector<1x32xf32> to vector<8x32xf32>
    %122 = arith.mulf %120, %121 : vector<8x32xf32>
    %123 = vector.broadcast %99 : vector<1x32xf32> to vector<8x32xf32>
    %124 = arith.addf %122, %123 : vector<8x32xf32>
    %c0_49 = arith.constant 0 : index
    %c0_50 = arith.constant 0 : index
    %c0_51 = arith.constant 0 : index
    %125 = vector.load %arg9[%c0_49, %c0_50, %c0_51] : memref<1x8x32xf32, #tpu.memory_space<vmem>>, vector<1x8x32xf32>
    %126 = vector.shape_cast %125 : vector<1x8x32xf32> to vector<8x32xf32>
    %127 = vector.shape_cast %124 : vector<8x32xf32> to vector<1x8x32xf32>
    tpu.vector_store %arg9[%c0_49, %c0_50, %c0_51], %127 {strides = array<i32>} : memref<1x8x32xf32, #tpu.memory_space<vmem>>, vector<1x8x32xf32>,
    return
  }
  func.func @transform_0(%arg0: i32) -> (i32, i32, i32) {
    %c0_i32 = arith.constant 0 : i32
    %c0_i32_0 = arith.constant 0 : i32
    %c0_i32_1 = arith.constant 0 : i32
    return %arg0, %c0_i32, %c0_i32_0 : i32, i32, i32
  }
  func.func @transform_1(%arg0: i32) -> (i32, i32) {
    %c0_i32 = arith.constant 0 : i32
    %c0_i32_0 = arith.constant 0 : i32
    %c0_i32_1 = arith.constant 0 : i32
    return %c0_i32, %c0_i32_0 : i32, i32
  }
  func.func @transform_2(%arg0: i32) -> (i32, i32) {
    %c0_i32 = arith.constant 0 : i32
    %c0_i32_0 = arith.constant 0 : i32
    %c0_i32_1 = arith.constant 0 : i32
    return %c0_i32, %c0_i32_0 : i32, i32
  }
  func.func @transform_3(%arg0: i32) -> (i32, i32) {
    %c0_i32 = arith.constant 0 : i32
    %c0_i32_0 = arith.constant 0 : i32
    %c0_i32_1 = arith.constant 0 : i32
    return %c0_i32, %c0_i32_0 : i32, i32
  }
  func.func @transform_4(%arg0: i32) -> (i32, i32) {
    %c0_i32 = arith.constant 0 : i32
    %c0_i32_0 = arith.constant 0 : i32
    %c0_i32_1 = arith.constant 0 : i32
    return %c0_i32, %c0_i32_0 : i32, i32
  }
  func.func @transform_5(%arg0: i32) -> (i32, i32) {
    %c0_i32 = arith.constant 0 : i32
    %c0_i32_0 = arith.constant 0 : i32
    %c0_i32_1 = arith.constant 0 : i32
    return %c0_i32, %c0_i32_0 : i32, i32
  }
  func.func @transform_6(%arg0: i32) -> (i32, i32) {
    %c0_i32 = arith.constant 0 : i32
    %c0_i32_0 = arith.constant 0 : i32
    %c0_i32_1 = arith.constant 0 : i32
    return %c0_i32, %c0_i32_0 : i32, i32
  }
  func.func @transform_7(%arg0: i32) -> (i32, i32) {
    %c0_i32 = arith.constant 0 : i32
    %c0_i32_0 = arith.constant 0 : i32
    %c0_i32_1 = arith.constant 0 : i32
    return %c0_i32, %c0_i32_0 : i32, i32
  }
  func.func @transform_8(%arg0: i32) -> (i32, i32, i32) {
    %c0_i32 = arith.constant 0 : i32
    %c0_i32_0 = arith.constant 0 : i32
    %c0_i32_1 = arith.constant 0 : i32
    return %arg0, %c0_i32, %c0_i32_0 : i32, i32, i32
  }
}

module attributes {stable_mosaic.version = 11 : i64} {
  func.func @_ffn_add_ln_kernel(%arg0: i32, %arg1: memref<16x32xf32, #tpu.memory_space<vmem>>, %arg2: memref<32x64xbf16, #tpu.memory_space<vmem>>, %arg3: memref<1x64xf32, #tpu.memory_space<vmem>>, %arg4: memref<64x32xbf16, #tpu.memory_space<vmem>>, %arg5: memref<1x32xf32, #tpu.memory_space<vmem>>, %arg6: memref<1x32xf32, #tpu.memory_space<vmem>>, %arg7: memref<1x32xf32, #tpu.memory_space<vmem>>, %arg8: memref<16x32xf32, #tpu.memory_space<vmem>>) attributes {dimension_semantics = [#tpu.dimension_semantics<parallel>], iteration_bounds = array<i64: 1>, scalar_prefetch = 0 : i64, scratch_operands = 0 : i64, tpu.core_type = #tpu.core_type<tc>, window_params = [{transform_indices = @transform_0, window_bounds = array<i64: 16, 32>}, {pipeline_mode = #tpu.pipeline_mode<synchronous>, transform_indices = @transform_1, window_bounds = array<i64: 32, 64>}, {pipeline_mode = #tpu.pipeline_mode<synchronous>, transform_indices = @transform_2, window_bounds = array<i64: 1, 64>}, {pipeline_mode = #tpu.pipeline_mode<synchronous>, transform_indices = @transform_3, window_bounds = array<i64: 64, 32>}, {pipeline_mode = #tpu.pipeline_mode<synchronous>, transform_indices = @transform_4, window_bounds = array<i64: 1, 32>}, {pipeline_mode = #tpu.pipeline_mode<synchronous>, transform_indices = @transform_5, window_bounds = array<i64: 1, 32>}, {pipeline_mode = #tpu.pipeline_mode<synchronous>, transform_indices = @transform_6, window_bounds = array<i64: 1, 32>}, {transform_indices = @transform_7, window_bounds = array<i64: 16, 32>}]} {
    %c0 = arith.constant 0 : index
    %c0_0 = arith.constant 0 : index
    %0 = vector.load %arg1[%c0, %c0_0] : memref<16x32xf32, #tpu.memory_space<vmem>>, vector<16x32xf32>
    %1 = arith.truncf %0 : vector<16x32xf32> to vector<16x32xbf16>
    %c0_1 = arith.constant 0 : index
    %c0_2 = arith.constant 0 : index
    %2 = vector.load %arg2[%c0_1, %c0_2] : memref<32x64xbf16, #tpu.memory_space<vmem>>, vector<32x64xbf16>
    %cst = arith.constant dense<0.000000e+00> : vector<16x64xf32>
    %3 = tpu.matmul %1, %2, %cst {dimension_numbers = #tpu.dot_dimension_numbers<[1], [0], [0], [1], [0, 0, 1, 1], [], []>} : vector<16x32xbf16>, vector<32x64xbf16>, vector<16x64xf32> -> vector<16x64xf32>
    %c0_3 = arith.constant 0 : index
    %c0_4 = arith.constant 0 : index
    %4 = vector.load %arg3[%c0_3, %c0_4] : memref<1x64xf32, #tpu.memory_space<vmem>>, vector<1x64xf32>
    %5 = vector.broadcast %4 : vector<1x64xf32> to vector<16x64xf32>
    %6 = arith.addf %3, %5 : vector<16x64xf32>
    %cst_5 = arith.constant 0.000000e+00 : f32
    %7 = vector.broadcast %cst_5 : f32 to vector<16x64xf32>
    %8 = arith.maximumf %6, %7 : vector<16x64xf32>
    %9 = arith.truncf %8 : vector<16x64xf32> to vector<16x64xbf16>
    %c0_6 = arith.constant 0 : index
    %c0_7 = arith.constant 0 : index
    %10 = vector.load %arg4[%c0_6, %c0_7] : memref<64x32xbf16, #tpu.memory_space<vmem>>, vector<64x32xbf16>
    %cst_8 = arith.constant dense<0.000000e+00> : vector<16x32xf32>
    %11 = tpu.matmul %9, %10, %cst_8 {dimension_numbers = #tpu.dot_dimension_numbers<[1], [0], [0], [1], [0, 0, 1, 1], [], []>} : vector<16x64xbf16>, vector<64x32xbf16>, vector<16x32xf32> -> vector<16x32xf32>
    %c0_9 = arith.constant 0 : index
    %c0_10 = arith.constant 0 : index
    %12 = vector.load %arg5[%c0_9, %c0_10] : memref<1x32xf32, #tpu.memory_space<vmem>>, vector<1x32xf32>
    %13 = vector.broadcast %12 : vector<1x32xf32> to vector<16x32xf32>
    %14 = arith.addf %11, %13 : vector<16x32xf32>
    %15 = arith.addf %0, %14 : vector<16x32xf32>
    %cst_11 = arith.constant dense<0.000000e+00> : vector<16xf32>
    %16 = vector.multi_reduction <add>, %15, %cst_11 [1] : vector<16x32xf32> to vector<16xf32>
    %17 = vector.shape_cast %16 : vector<16xf32> to vector<16x1xf32>
    %cst_12 = arith.constant 3.200000e+01 : f32
    %18 = vector.broadcast %cst_12 : f32 to vector<16x1xf32>
    %19 = arith.divf %17, %18 : vector<16x1xf32>
    %20 = vector.broadcast %19 : vector<16x1xf32> to vector<16x32xf32>
    %21 = arith.subf %15, %20 : vector<16x32xf32>
    %22 = arith.mulf %21, %21 : vector<16x32xf32>
    %cst_13 = arith.constant dense<0.000000e+00> : vector<16xf32>
    %23 = vector.multi_reduction <add>, %22, %cst_13 [1] : vector<16x32xf32> to vector<16xf32>
    %24 = vector.shape_cast %23 : vector<16xf32> to vector<16x1xf32>
    %cst_14 = arith.constant 3.200000e+01 : f32
    %25 = vector.broadcast %cst_14 : f32 to vector<16x1xf32>
    %26 = arith.divf %24, %25 : vector<16x1xf32>
    %cst_15 = arith.constant 9.99999974E-6 : f32
    %27 = vector.broadcast %cst_15 : f32 to vector<16x1xf32>
    %28 = arith.addf %26, %27 : vector<16x1xf32>
    %29 = math.rsqrt %28 : vector<16x1xf32>
    %30 = vector.broadcast %29 : vector<16x1xf32> to vector<16x32xf32>
    %31 = arith.mulf %21, %30 : vector<16x32xf32>
    %c0_16 = arith.constant 0 : index
    %c0_17 = arith.constant 0 : index
    %32 = vector.load %arg6[%c0_16, %c0_17] : memref<1x32xf32, #tpu.memory_space<vmem>>, vector<1x32xf32>
    %33 = vector.broadcast %32 : vector<1x32xf32> to vector<16x32xf32>
    %34 = arith.mulf %31, %33 : vector<16x32xf32>
    %c0_18 = arith.constant 0 : index
    %c0_19 = arith.constant 0 : index
    %35 = vector.load %arg7[%c0_18, %c0_19] : memref<1x32xf32, #tpu.memory_space<vmem>>, vector<1x32xf32>
    %36 = vector.broadcast %35 : vector<1x32xf32> to vector<16x32xf32>
    %37 = arith.addf %34, %36 : vector<16x32xf32>
    %c0_20 = arith.constant 0 : index
    %c0_21 = arith.constant 0 : index
    %38 = vector.load %arg8[%c0_20, %c0_21] : memref<16x32xf32, #tpu.memory_space<vmem>>, vector<16x32xf32>
    tpu.vector_store %arg8[%c0_20, %c0_21], %37 {strides = array<i32>} : memref<16x32xf32, #tpu.memory_space<vmem>>, vector<16x32xf32>,
    return
  }
  func.func @transform_0(%arg0: i32) -> (i32, i32) {
    %c0_i32 = arith.constant 0 : i32
    %c0_i32_0 = arith.constant 0 : i32
    return %arg0, %c0_i32 : i32, i32
  }
  func.func @transform_1(%arg0: i32) -> (i32, i32) {
    %c0_i32 = arith.constant 0 : i32
    %c0_i32_0 = arith.constant 0 : i32
    %c0_i32_1 = arith.constant 0 : i32
    return %c0_i32, %c0_i32_0 : i32, i32
  }
  func.func @transform_2(%arg0: i32) -> (i32, i32) {
    %c0_i32 = arith.constant 0 : i32
    %c0_i32_0 = arith.constant 0 : i32
    %c0_i32_1 = arith.constant 0 : i32
    return %c0_i32, %c0_i32_0 : i32, i32
  }
  func.func @transform_3(%arg0: i32) -> (i32, i32) {
    %c0_i32 = arith.constant 0 : i32
    %c0_i32_0 = arith.constant 0 : i32
    %c0_i32_1 = arith.constant 0 : i32
    return %c0_i32, %c0_i32_0 : i32, i32
  }
  func.func @transform_4(%arg0: i32) -> (i32, i32) {
    %c0_i32 = arith.constant 0 : i32
    %c0_i32_0 = arith.constant 0 : i32
    %c0_i32_1 = arith.constant 0 : i32
    return %c0_i32, %c0_i32_0 : i32, i32
  }
  func.func @transform_5(%arg0: i32) -> (i32, i32) {
    %c0_i32 = arith.constant 0 : i32
    %c0_i32_0 = arith.constant 0 : i32
    %c0_i32_1 = arith.constant 0 : i32
    return %c0_i32, %c0_i32_0 : i32, i32
  }
  func.func @transform_6(%arg0: i32) -> (i32, i32) {
    %c0_i32 = arith.constant 0 : i32
    %c0_i32_0 = arith.constant 0 : i32
    %c0_i32_1 = arith.constant 0 : i32
    return %c0_i32, %c0_i32_0 : i32, i32
  }
  func.func @transform_7(%arg0: i32) -> (i32, i32) {
    %c0_i32 = arith.constant 0 : i32
    %c0_i32_0 = arith.constant 0 : i32
    return %arg0, %c0_i32 : i32, i32
  }
}

module attributes {stable_mosaic.version = 11 : i64} {
  func.func @_layernorm_kernel(%arg0: i32, %arg1: memref<16x32xf32, #tpu.memory_space<vmem>>, %arg2: memref<1x32xf32, #tpu.memory_space<vmem>>, %arg3: memref<1x32xf32, #tpu.memory_space<vmem>>, %arg4: memref<16x32xf32, #tpu.memory_space<vmem>>) attributes {dimension_semantics = [#tpu.dimension_semantics<parallel>], iteration_bounds = array<i64: 1>, scalar_prefetch = 0 : i64, scratch_operands = 0 : i64, tpu.core_type = #tpu.core_type<tc>, window_params = [{transform_indices = @transform_0, window_bounds = array<i64: 16, 32>}, {pipeline_mode = #tpu.pipeline_mode<synchronous>, transform_indices = @transform_1, window_bounds = array<i64: 1, 32>}, {pipeline_mode = #tpu.pipeline_mode<synchronous>, transform_indices = @transform_2, window_bounds = array<i64: 1, 32>}, {transform_indices = @transform_3, window_bounds = array<i64: 16, 32>}]} {
    %c0 = arith.constant 0 : index
    %c0_0 = arith.constant 0 : index
    %0 = vector.load %arg1[%c0, %c0_0] : memref<16x32xf32, #tpu.memory_space<vmem>>, vector<16x32xf32>
    %cst = arith.constant dense<0.000000e+00> : vector<16xf32>
    %1 = vector.multi_reduction <add>, %0, %cst [1] : vector<16x32xf32> to vector<16xf32>
    %2 = vector.shape_cast %1 : vector<16xf32> to vector<16x1xf32>
    %cst_1 = arith.constant 3.200000e+01 : f32
    %3 = vector.broadcast %cst_1 : f32 to vector<16x1xf32>
    %4 = arith.divf %2, %3 : vector<16x1xf32>
    %5 = vector.broadcast %4 : vector<16x1xf32> to vector<16x32xf32>
    %6 = arith.subf %0, %5 : vector<16x32xf32>
    %7 = arith.mulf %6, %6 : vector<16x32xf32>
    %cst_2 = arith.constant dense<0.000000e+00> : vector<16xf32>
    %8 = vector.multi_reduction <add>, %7, %cst_2 [1] : vector<16x32xf32> to vector<16xf32>
    %9 = vector.shape_cast %8 : vector<16xf32> to vector<16x1xf32>
    %cst_3 = arith.constant 3.200000e+01 : f32
    %10 = vector.broadcast %cst_3 : f32 to vector<16x1xf32>
    %11 = arith.divf %9, %10 : vector<16x1xf32>
    %cst_4 = arith.constant 9.99999974E-6 : f32
    %12 = vector.broadcast %cst_4 : f32 to vector<16x1xf32>
    %13 = arith.addf %11, %12 : vector<16x1xf32>
    %14 = math.rsqrt %13 : vector<16x1xf32>
    %15 = vector.broadcast %14 : vector<16x1xf32> to vector<16x32xf32>
    %16 = arith.mulf %6, %15 : vector<16x32xf32>
    %c0_5 = arith.constant 0 : index
    %c0_6 = arith.constant 0 : index
    %17 = vector.load %arg2[%c0_5, %c0_6] : memref<1x32xf32, #tpu.memory_space<vmem>>, vector<1x32xf32>
    %18 = vector.broadcast %17 : vector<1x32xf32> to vector<16x32xf32>
    %19 = arith.mulf %16, %18 : vector<16x32xf32>
    %c0_7 = arith.constant 0 : index
    %c0_8 = arith.constant 0 : index
    %20 = vector.load %arg3[%c0_7, %c0_8] : memref<1x32xf32, #tpu.memory_space<vmem>>, vector<1x32xf32>
    %21 = vector.broadcast %20 : vector<1x32xf32> to vector<16x32xf32>
    %22 = arith.addf %19, %21 : vector<16x32xf32>
    %c0_9 = arith.constant 0 : index
    %c0_10 = arith.constant 0 : index
    %23 = vector.load %arg4[%c0_9, %c0_10] : memref<16x32xf32, #tpu.memory_space<vmem>>, vector<16x32xf32>
    tpu.vector_store %arg4[%c0_9, %c0_10], %22 {strides = array<i32>} : memref<16x32xf32, #tpu.memory_space<vmem>>, vector<16x32xf32>,
    return
  }
  func.func @transform_0(%arg0: i32) -> (i32, i32) {
    %c0_i32 = arith.constant 0 : i32
    %c0_i32_0 = arith.constant 0 : i32
    return %arg0, %c0_i32 : i32, i32
  }
  func.func @transform_1(%arg0: i32) -> (i32, i32) {
    %c0_i32 = arith.constant 0 : i32
    %c0_i32_0 = arith.constant 0 : i32
    %c0_i32_1 = arith.constant 0 : i32
    return %c0_i32, %c0_i32_0 : i32, i32
  }
  func.func @transform_2(%arg0: i32) -> (i32, i32) {
    %c0_i32 = arith.constant 0 : i32
    %c0_i32_0 = arith.constant 0 : i32
    %c0_i32_1 = arith.constant 0 : i32
    return %c0_i32, %c0_i32_0 : i32, i32
  }
  func.func @transform_3(%arg0: i32) -> (i32, i32) {
    %c0_i32 = arith.constant 0 : i32
    %c0_i32_0 = arith.constant 0 : i32
    return %arg0, %c0_i32 : i32, i32
  }
}

</mosaic_0001>

<bundles_post_ra>
// kernel: transformer_decoder_fwd.13
= control target key start
LH: loop header
LB: loop body
LE: loop exit
PB: predicated region body
PF: predicated region fallthrough
CT: control target
= control target key end

     0   :  { %vm16_vm0 = vcmask 261120   ;;  %s118_s0 = inlined_call_operand.vmem [shape: f32[16,32], index: 0, kind: input, shape index: {}]   ;;  %s119_s1 = inlined_call_operand.vmem [shape: f32[1,32], index: 1, kind: input, shape index: {}]   ;;  %s120_s2 = inlined_call_operand.vmem [shape: f32[1,32], index: 2, kind: input, shape index: {}]   ;;  %s121_s3 = inlined_call_operand.vmem [shape: f32[16,32], index: 3, kind: output, shape index: {}]  }
   0x1   :  { %v14_v0 = vld [vmem:[%s118_s0] sm:$0xff]  ;;  %v15_v1 = vld [vmem:[%s118_s0 + $0x8] sm:$0xff] }
   0x2   :  { %v17_v2 = vsel %vm16_vm0, %v14_v0, 0.0  ;;  %v20_v3 = vsel %vm16_vm0, %v15_v1, 0.0  ;;  %v68_v21 = vld [vmem:[%s119_s1] ss:$0 sm:$0xff] }
   0x3   :  { %18 = vadd.xlane.f32.xlu0 %v17_v2  ;;  %v69_v23 = vld [vmem:[%s120_s2] ss:$0 sm:$0xff] }
   0x7   :  { %21 = vadd.xlane.f32.xlu0 %v20_v3 }
  0x90   :  { %v19_v4 = vpop.xlane.xlu0 %18 }
  0x91   :  { %v24_v5 = vmul.f32 0.03125, %v19_v4 }
  0x93   :  { %v26_v6 = vsub.f32 %v14_v0, %v24_v5 }
  0x94   :  { %v22_v7 = vpop.xlane.xlu0 %21 }
  0x95   :  { %v25_v8 = vmul.f32 0.03125, %v22_v7  ;;  %v28_v9 = vmul.f32 %v26_v6, %v26_v6 }
  0x97   :  { %v27_v10 = vsub.f32 %v15_v1, %v25_v8  ;;  %v30_v11 = vsel %vm16_vm0, %v28_v9, 0.0 }
  0x98   :  { %31 = vadd.xlane.f32.xlu1 %v30_v11 }
  0x99   :  { %v29_v12 = vmul.f32 %v27_v10, %v27_v10 }
  0x9b   :  { %v33_v13 = vsel %vm16_vm0, %v29_v12, 0.0 }
  0x9c   :  { %34 = vadd.xlane.f32.xlu1 %v33_v13 }
 0x125   :  { %v32_v14 = vpop.xlane.xlu1 %31 }
 0x126   :  { %v36_v15 = vmul.f32 0.03125, %v32_v14 }
 0x128   :  { %v38_v16 = vadd.f32 1e-05, %v36_v15 }
 0x129   :  { %v35_v17 = vpop.xlane.xlu1 %34 }
 0x12a   :  { %70 = vrsqrt.f32 %v38_v16  ;;  %v37_v18 = vmul.f32 0.03125, %v35_v17 }
 0x12c   :  { %v39_v19 = vadd.f32 1e-05, %v37_v18 }
 0x12e   :  { %72 = vrsqrt.f32 %v39_v19 }
 0x134   :  { %v71_v20 = vpop.eup %70 }
 0x135   :  { %v42_v22 = vmul.f32 %v71_v20, %v26_v6 }
 0x137   :  { %v51_v24 = vmul.f32 %v68_v21, %v42_v22 }
 0x138   :  { %v73_v25 = vpop.eup %72 }
 0x139   :  { %v60_v26 = vadd.f32 %v69_v23, %v51_v24  ;;  %v43_v27 = vmul.f32 %v73_v25, %v27_v10 }
 0x13b   :  { %62 = vst.msk [vmem:[%s121_s3] sm:$0xff] %vm16_vm0, %v60_v26  ;;  %v52_v28 = vmul.f32 %v68_v21, %v43_v27 }
 0x13d   :  { %v61_v29 = vadd.f32 %v69_v23, %v52_v28 }
 0x13f   :  { %63 = vst.msk [vmem:[%s121_s3 + $0x8] sm:$0xff] %vm16_vm0, %v61_v29 }

// kernel: transformer_decoder_fwd.9
= control target key start
LH: loop header
LB: loop body
LE: loop exit
PB: predicated region body
PF: predicated region fallthrough
CT: control target
= control target key end

     0   :  { %v290_v0 = vmov 0.0   ;;  %vm291_vm0 = vmmov 0   ;;  %vm53_vm1 = vcmask 261120   ;;  %vm140_vm2 = vcmask 523264   ;;  %s381_s1 = inlined_call_operand.vmem [shape: bf16[32,64], index: 1, kind: input, shape index: {}]   ;;  %s382_s0 = inlined_call_operand.vmem [shape: f32[16,32], index: 0, kind: input, shape index: {}]   ;;  %s383_s3 = inlined_call_operand.vmem [shape: bf16[64,32], index: 3, kind: input, shape index: {}]   ;;  %s384_s2 = inlined_call_operand.vmem [shape: f32[1,64], index: 2, kind: input, shape index: {}]   ;;  %s385_s4 = inlined_call_operand.vmem [shape: f32[1,32], index: 4, kind: input, shape index: {}]   ;;  %s386_s5 = inlined_call_operand.vmem [shape: f32[1,32], index: 5, kind: input, shape index: {}]   ;;  %s387_s6 = inlined_call_operand.vmem [shape: f32[1,32], index: 6, kind: input, shape index: {}]   ;;  %s388_s7 = inlined_call_operand.vmem [shape: f32[16,32], index: 7, kind: output, shape index: {}]  }
   0x1   :  { %258 = vmatprep.subr.bf16.mxu0 %v290_v0  ;;  %v280_v1 = vld [vmem:[%s381_s1] sm:$0xff]   ;;  %262 = vmatprep.mubr.msk.bf16.mxu0 %vm291_vm0, %v290_v0  ;;  %v281_v2 = vld [vmem:[%s381_s1 + $0x8] sm:$0xff]   ;;  %v284_v8 = vld [vmem:[%s383_s3 + $0x10] sm:$0xff]  }
   0x2   :  { %266 = vmatprep.subr.bf16.mxu1 %v290_v0  ;;  %274 = vmatprep.mubr.msk.bf16.mxu1 %vm291_vm0, %v290_v0  ;;  %v27_v3 = vld [vmem:[%s382_s0] sm:$0xff]  ;;  %v28_v4 = vld [vmem:[%s382_s0 + $0x8] sm:$0xff]  ;;  %v285_v9 = vld [vmem:[%s383_s3 + $0x18] sm:$0xff]  }
   0x3   :  { %259 = vmatpush3.bf16.msra.mxu0 %v280_v1  ;;  %v282_v5 = vld [vmem:[%s383_s3] sm:$0xff]   ;;  %v283_v6 = vld [vmem:[%s383_s3 + $0x8] sm:$0xff]   ;;  %v29_v7 = vpack.c.bf16 %v28_v4, %v27_v3 }
   0x4   :  { %260 = vmatprep.subr.bf16.mxu0 %v290_v0  ;;  %267 = vmatpush3.bf16.msra.mxu1 %v282_v5  ;;  %v238_v10 = vld [vmem:[%s384_s2] ss:$0 sm:$0xff] }
   0x5   :  { %268 = vmatprep.subr.bf16.mxu1 %v290_v0  ;;  %v242_v20 = vld [vmem:[%s385_s4] ss:$0 sm:$0xff] }
   0x6   :  { %v248_v48 = vld [vmem:[%s386_s5] ss:$0 sm:$0xff] }
   0x7   :  { %261 = vmatpush3.bf16.msra.mxu0 %v281_v2  ;;  %v249_v50 = vld [vmem:[%s387_s6] ss:$0 sm:$0xff] }
   0x8   :  { %269 = vmatpush3.bf16.msra.mxu1 %v283_v6 }
   0x9   :  { %270 = vmatprep.subr.bf16.mxu1 %v290_v0 }
   0xa   :  { %263 = vmatmul.mubr.msk.bf16.vlgmr.msra.gmra.mrb[0].mxu0 %vm53_vm1, %v29_v7 }
   0xc   :  { %271 = vmatpush3.bf16.msra.mxu1 %v284_v8 }
   0xd   :  { %272 = vmatprep.subr.bf16.mxu1 %v290_v0 }
  0x10   :  { %273 = vmatpush3.bf16.msra.mxu1 %v285_v9 }
  0xdd   :  { %v91_v11 = vpop.f32.mrb[0].mxu0 }
  0xde   :  { %v92_v12 = vadd.f32 %v238_v10, %v91_v11  ;;  %v264_v13 = vpop.f32.mrb[1].mxu0 }
  0xdf   :  { %v94_v14 = vpop.f32.mrb[2].mxu0 }
  0xe0   :  { %v95_v15 = vadd.f32 %v238_v10, %v94_v14  ;;  %v265_v16 = vpop.f32.mrb[3].mxu0  ;;  %v98_v17 = vmax.f32 %v92_v12, 0.0 }
  0xe2   :  { %v99_v18 = vmax.f32 %v95_v15, 0.0 }
  0xe4   :  { %v100_v19 = vpack.c.bf16 %v99_v18, %v98_v17 }
  0xe6   :  { %275 = vmatmul.mubr.msk.bf16.vlgmr.msra.gmra.mrb[0].mxu1 %vm140_vm2, %v100_v19 }
 0x1b9   :  { %v178_v21 = vpop.f32.mrb[0].mxu1 }
 0x1ba   :  { %v179_v22 = vadd.f32 %v242_v20, %v178_v21  ;;  %v276_v23 = vpop.f32.mrb[1].mxu1 }
 0x1bb   :  { %v181_v24 = vpop.f32.mrb[2].mxu1 }
 0x1bc   :  { %v182_v25 = vadd.f32 %v242_v20, %v181_v24  ;;  %v277_v26 = vpop.f32.mrb[3].mxu1  ;;  %v185_v27 = vadd.f32 %v179_v22, %v27_v3 }
 0x1be   :  { %v187_v28 = vsel %vm53_vm1, %v185_v27, 0.0  ;;  %v186_v29 = vadd.f32 %v182_v25, %v28_v4 }
 0x1bf   :  { %188 = vadd.xlane.f32.xlu0 %v187_v28 }
 0x1c0   :  { %v190_v30 = vsel %vm53_vm1, %v186_v29, 0.0 }
 0x1c3   :  { %191 = vadd.xlane.f32.xlu0 %v190_v30 }
 0x24c   :  { %v189_v31 = vpop.xlane.xlu0 %188 }
 0x24d   :  { %v194_v32 = vmul.f32 0.03125, %v189_v31 }
 0x24f   :  { %v196_v33 = vsub.f32 %v185_v27, %v194_v32 }
 0x250   :  { %v192_v34 = vpop.xlane.xlu0 %191 }
 0x251   :  { %v195_v35 = vmul.f32 0.03125, %v192_v34  ;;  %v198_v36 = vmul.f32 %v196_v33, %v196_v33 }
 0x253   :  { %v197_v37 = vsub.f32 %v186_v29, %v195_v35  ;;  %v200_v38 = vsel %vm53_vm1, %v198_v36, 0.0 }
 0x254   :  { %201 = vadd.xlane.f32.xlu1 %v200_v38 }
 0x255   :  { %v199_v39 = vmul.f32 %v197_v37, %v197_v37 }
 0x257   :  { %v203_v40 = vsel %vm53_vm1, %v199_v39, 0.0 }
 0x258   :  { %204 = vadd.xlane.f32.xlu1 %v203_v40 }
 0x2e1   :  { %v202_v41 = vpop.xlane.xlu1 %201 }
 0x2e2   :  { %v206_v42 = vmul.f32 0.03125, %v202_v41 }
 0x2e4   :  { %v208_v43 = vadd.f32 1e-05, %v206_v42 }
 0x2e5   :  { %v205_v44 = vpop.xlane.xlu1 %204 }
 0x2e6   :  { %286 = vrsqrt.f32 %v208_v43  ;;  %v207_v45 = vmul.f32 0.03125, %v205_v44 }
 0x2e8   :  { %v209_v46 = vadd.f32 1e-05, %v207_v45 }
 0x2ea   :  { %288 = vrsqrt.f32 %v209_v46 }
 0x2f0   :  { %v287_v47 = vpop.eup %286 }
 0x2f1   :  { %v212_v49 = vmul.f32 %v287_v47, %v196_v33 }
 0x2f3   :  { %v221_v51 = vmul.f32 %v248_v48, %v212_v49 }
 0x2f4   :  { %v289_v52 = vpop.eup %288 }
 0x2f5   :  { %v230_v53 = vadd.f32 %v249_v50, %v221_v51  ;;  %v213_v54 = vmul.f32 %v289_v52, %v197_v37 }
 0x2f7   :  { %232 = vst.msk [vmem:[%s388_s7] sm:$0xff] %vm53_vm1, %v230_v53  ;;  %v222_v55 = vmul.f32 %v248_v48, %v213_v54 }
 0x2f9   :  { %v231_v56 = vadd.f32 %v249_v50, %v222_v55 }
 0x2fb   :  { %233 = vst.msk [vmem:[%s388_s7 + $0x8] sm:$0xff] %vm53_vm1, %v231_v56 }

// kernel: transformer_decoder_fwd.7
= control target key start
LH: loop header
LB: loop body
LE: loop exit
PB: predicated region body
PF: predicated region fallthrough
CT: control target
= control target key end

     0   :  { %s1218_s27 = smov 0   ;;  %s1350_s0 = inlined_call_operand.vmem [shape: f32[2,8,32], index: 0, kind: input, shape index: {}]   ;;  %s1351_s1 = inlined_call_operand.vmem [shape: bf16[32,96], index: 1, kind: input, shape index: {}]   ;;  %s1352_s2 = inlined_call_operand.vmem [shape: f32[1,96], index: 2, kind: input, shape index: {}]   ;;  %s1353_s3 = inlined_call_operand.vmem [shape: bf16[32,32], index: 3, kind: input, shape index: {}]   ;;  %s1354_s4 = inlined_call_operand.vmem [shape: f32[1,32], index: 4, kind: input, shape index: {}]   ;;  %s1355_s5 = inlined_call_operand.vmem [shape: f32[1,32], index: 5, kind: input, shape index: {}]   ;;  %s1356_s6 = inlined_call_operand.vmem [shape: f32[1,32], index: 6, kind: input, shape index: {}]   ;;  %s1357_s7 = inlined_call_operand.vmem [shape: f32[8,8], index: 7, kind: input, shape index: {}]   ;;  %s1358_s8 = inlined_call_operand.vmem [shape: f32[2,8,32], index: 8, kind: output, shape index: {}]  }
   0x1 LB: > { %s990_s28 = sadd.s32 4294967295, %s1155_s27   ;;  %p994_p0 = scmp.ge.s32.totalorder %s1155_s27, 1  ;;  %s1155_s27 = sphi %s1218_s27, %s18_s27  }
   0x2   : > { %p261_p1 = scmp.lt.s32.totalorder %s1155_s27, 3 }
   0x4   : > { %p262_p2 = pnand %p994_p0, %p261_p1 }
   0x5   : > { %v1127_v0 = vld [vmem:[%s1351_s1] sm:$0xff] (!%p262_p2)   ;;  %v1157_v1 = vmov (!%p262_p2), 0.0   ;;  %v1128_v2 = vld [vmem:[%s1351_s1 + $0x8] sm:$0xff] (!%p262_p2)   ;;  %vm1158_vm0 = vmmov (!%p262_p2), 0   ;;  %p293_p3 = scmp.lt.s32.totalorder (!%p262_p2), %s990_s28, 1  ;;  %vm328_vm1 = vcmask (!%p262_p2), 261120  }
   0x6   : > { %265 = sbr.rel (%p262_p2) target bundleno = 1818 (0x71a), region = 52  ;;  %1039 = vmatprep.subr.bf16.mxu0 (!%p262_p2), %v1157_v1  ;;  %1047 = vmatprep.subr.bf16.mxu1 (!%p262_p2), %v1157_v1  ;;  %v997_v5 = vld [vmem:[%s1352_s2] ss:$0 sm:$0xff] (!%p262_p2)  ;;  %s1159_s17 = smov (!%p262_p2), 120   ;;  %vm376_vm2 = vcmask (!%p262_p2), 64512   ;;  %vm441_vm3 = vcmask (!%p262_p2), 1043456  }
   0x7   : > { %1040 = vmatpush3.bf16.msra.mxu0 (!%p262_p2), %v1127_v0  ;;  %1043 = vmatprep.mubr.msk.bf16.mxu0 (!%p262_p2), %vm1158_vm0, %v1157_v1  ;;  %s1160_s18 = smov (!%p262_p2), 96   ;;  %s1161_s19 = smov (!%p262_p2), 80   ;;  %v302_v23 = vld [vmem:[%s1357_s7] sm:$0xff] (!%p262_p2)  ;;  %vm601_vm4 = vcmask (!%p262_p2), 130112   ;;  %vm718_vm5 = vcmask (!%p262_p2), 195712   ;;  %vm835_vm6 = vcmask (!%p262_p2), 261312  }
   0x8   : > { %1041 = vmatprep.subr.bf16.mxu0 (!%p262_p2), %v1157_v1  ;;  %1049 = vmatprep.mubr.msk.bf16.mxu1 (!%p262_p2), %vm1158_vm0, %v1157_v1  ;;  %s1162_s20 = smov (!%p262_p2), 88   ;;  %s1163_s21 = smov (!%p262_p2), 72  }
   0x9   : > { %s1164_s22 = smov (!%p262_p2), 112   ;;  %s1165_s23 = smov (!%p262_p2), 104  }
   0xa   : > { %s1166_s26 = smov (!%p262_p2), 56   ;;  %s1167_s29 = smov (!%p262_p2), 64  }
   0xb   : > { %1042 = vmatpush3.bf16.msra.mxu0 (!%p262_p2), %v1128_v2  ;;  %s1168_s30 = smov (!%p262_p2), 40   ;;  %s1169_s9 = smov (!%p262_p2), 48  }
   0xc   : > { %1053 = vmatprep.subr.bf16.mxu0 (!%p262_p2), %v1157_v1  ;;  %s1170_s10 = smov (!%p262_p2), 8   ;;  %s1171_s16 = smov (!%p262_p2), 16  }
   0xd   : > { %s1360_s28 = smov (!%p293_p3, %s990_s28), 1 }
   0xe   : > { %s995_s11 = sshll.u32 %s1360_s28, 3 }
   0xf   : > { %s296_s14 = scalar_lea.vmem %s1350_s0, %s995_s11 }
  0x10   : > { %v1248_v3 = vld [vmem:[%s296_s14] sm:$0xff] }
  0x11   : > { %v304_v4 = vpack.c.bf16 %v1248_v3, %v1248_v3 }
  0x13   : > { %1044 = vmatmul.mubr.msk.bf16.vlgmr.msra.gmra.mrb[0].mxu0 %vm328_vm1, %v304_v4 }
  0x14   : > { %1055 = vmatprep.mubr.msk.bf16.mxu0 %vm1158_vm0, %v1157_v1 }
  0xe6   : > { %v366_v6 = vpop.f32.mrb[0].mxu0 }
  0xe7   : > { %v367_v7 = vadd.f32 %v997_v5, %v366_v6  ;;  %v1045_v8 = vpop.f32.mrb[1].mxu0 }
  0xe8   : > { %v369_v9 = vpop.f32.mrb[2].mxu0 }
  0xe9   : > { %v1258_v10 = vpack.c.bf16 %v367_v7, %v367_v7  ;;  %v1046_v11 = vpop.f32.mrb[3].mxu0 }
  0xeb   : > { %486 = vrot.lane.b32.xlu1 %v1258_v10, %s1159_s17  ;;  %374 = vrot.lane.b32.xlu0 %v1258_v10, %s1160_s18  ;;  %s1172_s17 = smov 24  }
  0xef   : > { %605 = vrot.lane.b32.xlu1 %v1258_v10, %s1161_s19  ;;  %488 = vrot.lane.b32.xlu0 %v1258_v10, %s1162_s20 }
  0xf3   : > { %722 = vrot.lane.b32.xlu1 %v1258_v10, %s1163_s21  ;;  %603 = vrot.lane.b32.xlu0 %v1258_v10, %s1164_s22 }
  0xf7   : > { %720 = vrot.lane.b32.xlu0 %v1258_v10, %s1165_s23 }
 0x15d   : > { %v375_v12 = vpop.permute.xlu0 %374  ;;  %v487_v15 = vpop.permute.xlu1 %486 }
 0x15e   : > { %v381_v13 = vsel %vm376_vm2, %v375_v12, 0 }
 0x15f   : > { %1048 = vmatpush3.bf16.xpose.msra.mxu1 %v381_v13 }
 0x160   : > { %1059 = vmatprep.subr.bf16.mxu1 %v1157_v1 }
 0x161   : > { %v489_v14 = vpop.permute.xlu0 %488  ;;  %v606_v17 = vpop.permute.xlu1 %605 }
 0x162   : > { %v494_v16 = vsel %vm376_vm2, %v489_v14, 0  ;;  %v611_v18 = vsel %vm376_vm2, %v606_v17, 0 }
 0x165   : > { %v723_v19 = vpop.permute.xlu1 %722  ;;  %v604_v20 = vpop.permute.xlu0 %603 }
 0x166   : > { %1050 = vmatmul.mubr.msk.bf16.vlgmr.msra.gmra.mrb[0].mxu1 %vm376_vm2, %v1258_v10  ;;  %v728_v21 = vsel %vm376_vm2, %v723_v19, 0 }
 0x167   : > { %1060 = vmatpush3.bf16.xpose.msra.mxu1 %v494_v16  ;;  %1061 = vmatprep.mubr.msk.bf16.mxu1 %vm1158_vm0, %v1157_v1 }
 0x168   : > { %1071 = vmatprep.subr.bf16.mxu1 %v1157_v1 }
 0x169   : > { %v721_v22 = vpop.permute.xlu0 %720 }
 0x16e   : > { %1062 = vmatmul.mubr.msk.bf16.vlgmr.msra.gmra.mrb[4].mxu1 %vm376_vm2, %v487_v15 }
 0x16f   : > { %1072 = vmatpush3.bf16.xpose.msra.mxu1 %v611_v18  ;;  %1073 = vmatprep.mubr.msk.bf16.mxu1 %vm1158_vm0, %v1157_v1 }
 0x170   : > { %1083 = vmatprep.subr.bf16.mxu1 %v1157_v1 }
 0x176   : > { %1074 = vmatmul.mubr.msk.bf16.vlgmr.msra.gmra.mrb[8].mxu1 %vm376_vm2, %v604_v20 }
 0x177   : > { %1084 = vmatpush3.bf16.xpose.msra.mxu1 %v728_v21  ;;  %1085 = vmatprep.mubr.msk.bf16.mxu1 %vm1158_vm0, %v1157_v1 }
 0x178   : > { %1095 = vmatprep.subr.bf16.mxu1 %v1157_v1 }
 0x17e   : > { %1086 = vmatmul.mubr.msk.bf16.vlgmr.msra.gmra.mrb[12].mxu1 %vm376_vm2, %v721_v22 }
 0x17f   : > { %1099 = vmatprep.mubr.msk.bf16.mxu1 %vm1158_vm0, %v1157_v1 }
 0x239   : > { %v417_v24 = vpop.f32.mrb[0].mxu1 }
 0x23a   : > { %v418_v25 = vadd.f32 %v417_v24, %v302_v23  ;;  %v1051_v26 = vpop.f32.mrb[1].mxu1 }
 0x23b   : > { %v420_v27 = vpop.f32.mrb[2].mxu1 }
 0x23c   : > { %v1052_v28 = vpop.f32.mrb[3].mxu1  ;;  %v423_v29 = vsel %vm376_vm2, %v418_v25, -inf }
 0x23d   : > { %424 = vmax.xlane.f32.xlu1 %v423_v29 }
 0x241   : > { %v530_v30 = vpop.f32.mrb[4].mxu1 }
 0x242   : > { %v531_v31 = vadd.f32 %v530_v30, %v302_v23  ;;  %v1063_v32 = vpop.f32.mrb[5].mxu1 }
 0x243   : > { %v533_v33 = vpop.f32.mrb[6].mxu1 }
 0x244   : > { %v1064_v34 = vpop.f32.mrb[7].mxu1  ;;  %v536_v35 = vsel %vm376_vm2, %v531_v31, -inf }
 0x245   : > { %537 = vmax.xlane.f32.xlu0 %v536_v35 }
 0x249   : > { %v647_v36 = vpop.f32.mrb[8].mxu1 }
 0x24a   : > { %v648_v37 = vadd.f32 %v647_v36, %v302_v23  ;;  %v1075_v38 = vpop.f32.mrb[9].mxu1 }
 0x24b   : > { %v650_v39 = vpop.f32.mrb[10].mxu1 }
 0x24c   : > { %v1076_v40 = vpop.f32.mrb[11].mxu1  ;;  %v653_v41 = vsel %vm376_vm2, %v648_v37, -inf }
 0x24d   : > { %654 = vmax.xlane.f32.xlu0 %v653_v41 }
 0x251   : > { %v764_v42 = vpop.f32.mrb[12].mxu1 }
 0x252   : > { %v765_v43 = vadd.f32 %v764_v42, %v302_v23  ;;  %v1087_v44 = vpop.f32.mrb[13].mxu1  ;;  %v1129_v42 = vld [vmem:[%s1353_s3] sm:$0xff]  }
 0x253   : > { %v767_v45 = vpop.f32.mrb[14].mxu1  ;;  %1096 = vmatpush3.bf16.msra.mxu1 %v1129_v42 }
 0x254   : > { %v1088_v46 = vpop.f32.mrb[15].mxu1  ;;  %v770_v47 = vsel %vm376_vm2, %v765_v43, -inf  ;;  %1097 = vmatprep.subr.bf16.mxu1 %v1157_v1 }
 0x255   : > { %771 = vmax.xlane.f32.xlu1 %v770_v47 }
 0x2ca   : > { %v425_v48 = vpop.xlane.xlu1 %424 }
 0x2cb   : > { %v426_v49 = vsub.f32 %v418_v25, %v425_v48 }
 0x2cd   : > { %v427_v50 = vmul.f32 1.442695, %v426_v49 }
 0x2cf   : > { %1131 = vpow2.f32 %v427_v50 }
 0x2d2   : > { %v538_v51 = vpop.xlane.xlu0 %537 }
 0x2d3   : > { %v539_v52 = vsub.f32 %v531_v31, %v538_v51 }
 0x2d5   : > { %v540_v53 = vmul.f32 1.442695, %v539_v52 }
 0x2d7   : > { %1133 = vpow2.f32 %v540_v53 }
 0x2d9   : > { %v1132_v54 = vpop.eup %1131 }
 0x2da   : > { %v655_v55 = vpop.xlane.xlu0 %654  ;;  %v429_v56 = vsel %vm376_vm2, %v1132_v54, 0.0 }
 0x2db   : > { %v656_v57 = vsub.f32 %v648_v37, %v655_v55  ;;  %430 = vadd.xlane.f32.xlu0 %v429_v56  ;;  %v1009_v56 = vld [vmem:[%s1354_s4] ss:$0 sm:$0xff] }
 0x2dd   : > { %v657_v58 = vmul.f32 1.442695, %v656_v57 }
 0x2df   : > { %1135 = vpow2.f32 %v657_v58 }
 0x2e1   : > { %v1134_v59 = vpop.eup %1133 }
 0x2e2   : > { %v542_v60 = vsel %vm376_vm2, %v1134_v59, 0.0  ;;  %v772_v63 = vpop.xlane.xlu1 %771 }
 0x2e3   : > { %543 = vadd.xlane.f32.xlu1 %v542_v60  ;;  %v773_v0 = vsub.f32 %v765_v43, %v772_v63  ;;  %v1130_v43 = vld [vmem:[%s1353_s3 + $0x8] sm:$0xff]  }
 0x2e4   : > { %1098 = vmatpush3.bf16.msra.mxu1 %v1130_v43 }
 0x2e5   : > { %v774_v2 = vmul.f32 1.442695, %v773_v0 }
 0x2e7   : > { %1137 = vpow2.f32 %v774_v2 }
 0x2e9   : > { %v1136_v61 = vpop.eup %1135 }
 0x2ea   : > { %v659_v62 = vsel %vm376_vm2, %v1136_v61, 0.0 }
 0x2eb   : > { %660 = vadd.xlane.f32.xlu0 %v659_v62 }
 0x2f1   : > { %v1138_v4 = vpop.eup %1137 }
 0x2f2   : > { %v776_v5 = vsel %vm376_vm2, %v1138_v4, 0.0 }
 0x2f4   : > { %549 = vrot.lane.b32.xlu1 %v1258_v10, %s1166_s26  ;;  %s300_s26 = scalar_lea.vmem %s1358_s8, %s995_s11 }
 0x301   : > { %436 = vrot.lane.b32.xlu0 %v1258_v10, %s1167_s29 }
 0x305   : > { %783 = vrot.lane.b32.xlu0 %v1258_v10, %s1168_s30 }
 0x318   : > { %777 = vadd.xlane.f32.xlu1 %v776_v5 }
 0x329   : > { %666 = vrot.lane.b32.xlu1 %v1258_v10, %s1169_s9 }
 0x368   : > { %v431_v6 = vpop.xlane.xlu0 %430 }
 0x369   : > { %v432_v7 = vmax.f32 %v431_v6, 1e-30 }
 0x36b   : > { %1139 = vrcp.f32 %v432_v7 }
 0x370   : > { %v544_v8 = vpop.xlane.xlu1 %543 }
 0x371   : > { %v545_v9 = vmax.f32 %v544_v8, 1e-30 }
 0x373   : > { %1141 = vrcp.f32 %v545_v9 }
 0x374   : > { %v550_v16 = vpop.permute.xlu1 %549 }
 0x375   : > { %v1140_v11 = vpop.eup %1139  ;;  %v555_v10 = vsel %vm441_vm3, %v550_v16, 0 }
 0x376   : > { %v434_v13 = vmul.f32 %v1140_v11, %v1132_v54 }
 0x378   : > { %v661_v12 = vpop.xlane.xlu0 %660  ;;  %v435_v17 = vpack.c.bf16 %v434_v13, %v434_v13  ;;  %v1014_v13 = vld [vmem:[%s1356_s6] ss:$0 sm:$0xff] }
 0x379   : > { %v662_v21 = vmax.f32 %v661_v12, 1e-30 }
 0x37b   : > { %1143 = vrcp.f32 %v662_v21 }
 0x37c   : > { %v437_v14 = vpop.permute.xlu0 %436 }
 0x37d   : > { %v443_v15 = vsel %vm441_vm3, %v437_v14, 0  ;;  %v1142_v18 = vpop.eup %1141 }
 0x37e   : > { %1054 = vmatpush3.bf16.msra.mxu0 %v443_v15  ;;  %v547_v19 = vmul.f32 %v1142_v18, %v1134_v59 }
 0x37f   : > { %1065 = vmatprep.subr.bf16.mxu0 %v1157_v1 }
 0x380   : > { %v548_v20 = vpack.c.bf16 %v547_v19, %v547_v19  ;;  %v784_v28 = vpop.permute.xlu0 %783 }
 0x381   : > { %1056 = vmatmul.mubr.msk.bf16.vlgmr.msra.gmra.mrb[4].mxu0 %vm376_vm2, %v435_v17  ;;  %v789_v30 = vsel %vm441_vm3, %v784_v28, 0 }
 0x382   : > { %1066 = vmatpush3.bf16.msra.mxu0 %v555_v10  ;;  %1067 = vmatprep.mubr.msk.bf16.mxu0 %vm1158_vm0, %v1157_v1 }
 0x383   : > { %1077 = vmatprep.subr.bf16.mxu0 %v1157_v1 }
 0x385   : > { %v1144_v22 = vpop.eup %1143 }
 0x386   : > { %v664_v25 = vmul.f32 %v1144_v22, %v1136_v61 }
 0x388   : > { %v665_v29 = vpack.c.bf16 %v664_v25, %v664_v25 }
 0x389   : > { %1068 = vmatmul.mubr.msk.bf16.vlgmr.msra.gmra.mrb[8].mxu0 %vm376_vm2, %v548_v20 }
 0x38a   : > { %1079 = vmatprep.mubr.msk.bf16.mxu0 %vm1158_vm0, %v1157_v1 }
 0x3a5   : > { %v778_v23 = vpop.xlane.xlu1 %777 }
 0x3a6   : > { %v779_v24 = vmax.f32 %v778_v23, 1e-30 }
 0x3a8   : > { %1145 = vrcp.f32 %v779_v24 }
 0x3a9   : > { %v667_v26 = vpop.permute.xlu1 %666 }
 0x3aa   : > { %v672_v27 = vsel %vm441_vm3, %v667_v26, 0 }
 0x3ab   : > { %1078 = vmatpush3.bf16.msra.mxu0 %v672_v27 }
 0x3ac   : > { %1089 = vmatprep.subr.bf16.mxu0 %v1157_v1 }
 0x3ae   : > { %1080 = vmatmul.mubr.msk.bf16.vlgmr.msra.gmra.mrb[12].mxu0 %vm376_vm2, %v665_v29 }
 0x3af   : > { %1090 = vmatpush3.bf16.msra.mxu0 %v789_v30  ;;  %1091 = vmatprep.mubr.msk.bf16.mxu0 %vm1158_vm0, %v1157_v1 }
 0x3b2   : > { %v1146_v31 = vpop.eup %1145 }
 0x3b3   : > { %v781_v32 = vmul.f32 %v1146_v31, %v1138_v4 }
 0x3b5   : > { %v782_v33 = vpack.c.bf16 %v781_v32, %v781_v32 }
 0x3b7   : > { %1092 = vmatmul.mubr.msk.bf16.vlgmr.msra.gmra.mrb[16].mxu0 %vm376_vm2, %v782_v33 }
 0x454   : > { %v479_v34 = vpop.f32.mrb[4].mxu0 }
 0x455   : > { %485 = vst.msk [vmem:[#allocation2] sm:$0xff] %vm376_vm2, %v479_v34  ;;  %v1057_v35 = vpop.f32.mrb[5].mxu0 }
 0x456   : > { %v482_v36 = vpop.f32.mrb[6].mxu0 }
 0x457   : > { %v1058_v37 = vpop.f32.mrb[7].mxu0 }
 0x45c   : > { %v591_v38 = vpop.f32.mrb[8].mxu0 }
 0x45d   : > { %598 = vrot.lane.b32.xlu1 %v591_v38, %s1170_s10  ;;  %v1069_v39 = vpop.f32.mrb[9].mxu0 }
 0x45e   : > { %v594_v40 = vpop.f32.mrb[10].mxu0 }
 0x45f   : > { %v1070_v41 = vpop.f32.mrb[11].mxu0 }
 0x481   : > { %v708_v44 = vpop.f32.mrb[12].mxu0 }
 0x482   : > { %715 = vrot.lane.b32.xlu0 %v708_v44, %s1171_s16  ;;  %v1081_v45 = vpop.f32.mrb[13].mxu0 }
 0x483   : > { %v711_v46 = vpop.f32.mrb[14].mxu0 }
 0x484   : > { %v1082_v47 = vpop.f32.mrb[15].mxu0 }
 0x48a   : > { %v825_v48 = vpop.f32.mrb[16].mxu0 }
 0x48b   : > { %832 = vrot.lane.b32.xlu1 %v825_v48, %s1172_s17  ;;  %v1093_v49 = vpop.f32.mrb[17].mxu0 }
 0x48c   : > { %v828_v50 = vpop.f32.mrb[18].mxu0 }
 0x48d   : > { %v1094_v51 = vpop.f32.mrb[19].mxu0 }
 0x4cf   : > { %v599_v52 = vpop.permute.xlu1 %598 }
 0x4d0   : > { %602 = vst.msk [vmem:[#allocation2] sm:$0xff] %vm601_vm4, %v599_v52 }
 0x4f4   : > { %v716_v53 = vpop.permute.xlu0 %715 }
 0x4f5   : > { %719 = vst.msk [vmem:[#allocation2] sm:$0xff] %vm718_vm5, %v716_v53 }
 0x4fd   : > { %v833_v1 = vpop.permute.xlu1 %832 }
 0x4fe   : > { %836 = vst.msk [vmem:[#allocation2] sm:$0xff] %vm835_vm6, %v833_v1 }
 0x505   : > { %v837_v54 = vld [vmem:[#allocation2] sm:$0xff] }
 0x506   : > { %v845_v55 = vpack.c.bf16 %v837_v54, %v837_v54 }
 0x508   : > { %1100 = vmatmul.mubr.msk.bf16.vlgmr.msra.gmra.mrb[16].mxu1 %vm328_vm1, %v845_v55 }
 0x5db   : > { %v901_v57 = vpop.f32.mrb[16].mxu1 }
 0x5dc   : > { %v902_v58 = vadd.f32 %v1009_v56, %v901_v57  ;;  %v1101_v59 = vpop.f32.mrb[17].mxu1 }
 0x5dd   : > { %v904_v60 = vpop.f32.mrb[18].mxu1 }
 0x5de   : > { %v1102_v61 = vpop.f32.mrb[19].mxu1  ;;  %v907_v62 = vadd.f32 %v902_v58, %v1248_v3  ;;  %v1013_v3 = vld [vmem:[%s1355_s5] ss:$0 sm:$0xff] }
 0x5e0   : > { %v908_v63 = vsel %vm328_vm1, %v907_v62, 0.0 }
 0x5e1   : > { %909 = vadd.xlane.f32.xlu0 %v908_v63 }
 0x66e   : > { %v910_v0 = vpop.xlane.xlu0 %909 }
 0x66f   : > { %v912_v2 = vmul.f32 0.03125, %v910_v0 }
 0x671   : > { %v913_v4 = vsub.f32 %v907_v62, %v912_v2 }
 0x673   : > { %v914_v5 = vmul.f32 %v913_v4, %v913_v4 }
 0x675   : > { %v915_v6 = vsel %vm328_vm1, %v914_v5, 0.0 }
 0x676   : > { %916 = vadd.xlane.f32.xlu1 %v915_v6 }
 0x703   : > { %v917_v7 = vpop.xlane.xlu1 %916 }
 0x704   : > { %v918_v8 = vmul.f32 0.03125, %v917_v7 }
 0x706   : > { %v919_v9 = vadd.f32 1e-05, %v918_v8 }
 0x708   : > { %1147 = vrsqrt.f32 %v919_v9 }
 0x712   : > { %v1148_v11 = vpop.eup %1147 }
 0x713   : > { %v921_v12 = vmul.f32 %v1148_v11, %v913_v4 }
 0x715   : > { %v928_v14 = vmul.f32 %v1013_v3, %v921_v12 }
 0x717   : > { %v935_v15 = vadd.f32 %v1014_v13, %v928_v14 }
 0x719   : > { %936 = vst.msk [vmem:[%s300_s26] sm:$0xff] %vm328_vm1, %v935_v15 }
 0x71a PF: > { %s18_s27 = sadd.s32 1, %s1155_s27  }
 0x71b   : > { %p15_p4 = scmp.ge.s32.totalorder %s18_s27, 4  }
 0x71d   :  { %17 = sbr.rel (!%p15_p4) target bundleno = 1 (0x1), region = 82 }

// kernel: transformer_decoder_fwd.8
= control target key start
LH: loop header
LB: loop body
LE: loop exit
PB: predicated region body
PF: predicated region fallthrough
CT: control target
= control target key end

     0   :  { %s1387_s13 = smov 0   ;;  %s1526_s0 = inlined_call_operand.vmem [shape: f32[2,8,32], index: 0, kind: input, shape index: {}]   ;;  %s1527_s1 = inlined_call_operand.vmem [shape: f32[2,16,32], index: 1, kind: input, shape index: {}]   ;;  %s1528_s2 = inlined_call_operand.vmem [shape: bf16[32,32], index: 2, kind: input, shape index: {}]   ;;  %s1529_s3 = inlined_call_operand.vmem [shape: f32[1,32], index: 3, kind: input, shape index: {}]   ;;  %s1530_s4 = inlined_call_operand.vmem [shape: bf16[32,64], index: 4, kind: input, shape index: {}]   ;;  %s1531_s5 = inlined_call_operand.vmem [shape: f32[1,64], index: 5, kind: input, shape index: {}]   ;;  %s1532_s6 = inlined_call_operand.vmem [shape: bf16[32,32], index: 6, kind: input, shape index: {}]   ;;  %s1533_s7 = inlined_call_operand.vmem [shape: f32[1,32], index: 7, kind: input, shape index: {}]   ;;  %s1534_s8 = inlined_call_operand.vmem [shape: f32[1,32], index: 8, kind: input, shape index: {}]   ;;  %s1535_s9 = inlined_call_operand.vmem [shape: f32[1,32], index: 9, kind: input, shape index: {}]   ;;  %s1536_s10 = inlined_call_operand.vmem [shape: f32[2,8,32], index: 10, kind: output, shape index: {}]  }
   0x1 LB: > { %s1137_s14 = sadd.s32 4294967295, %s1318_s13   ;;  %p1141_p0 = scmp.ge.s32.totalorder %s1318_s13, 1  ;;  %s1318_s13 = sphi %s1387_s13, %s20_s13  }
   0x2   : > { %p321_p1 = scmp.lt.s32.totalorder %s1318_s13, 3 }
   0x4   : > { %p322_p2 = pnand %p1141_p0, %p321_p1 }
   0x5   : > { %v1288_v0 = vld [vmem:[%s1530_s4] sm:$0xff] (!%p322_p2)   ;;  %v1320_v1 = vmov (!%p322_p2), 0.0   ;;  %v1289_v2 = vld [vmem:[%s1530_s4 + $0x8] sm:$0xff] (!%p322_p2)   ;;  %vm1321_vm0 = vmmov (!%p322_p2), 0   ;;  %p362_p3 = scmp.lt.s32.totalorder (!%p322_p2), %s1137_s14, 1  ;;  %vm403_vm1 = vcmask (!%p322_p2), 261120  }
   0x6   : > { %325 = sbr.rel (%p322_p2) target bundleno = 1779 (0x6f3), region = 60  ;;  %1204 = vmatprep.subr.bf16.mxu1 (!%p322_p2), %v1320_v1  ;;  %1196 = vmatprep.subr.bf16.mxu0 (!%p322_p2), %v1320_v1  ;;  %v1290_v3 = vld [vmem:[%s1528_s2] sm:$0xff] (!%p322_p2)   ;;  %v1291_v4 = vld [vmem:[%s1528_s2 + $0x8] sm:$0xff] (!%p322_p2)   ;;  %vm517_vm2 = vcmask (!%p322_p2), 64512   ;;  %s1322_s17 = smov (!%p322_p2), 112   ;;  %vm564_vm3 = vcmask (!%p322_p2), 130048  }
   0x7   : > { %1205 = vmatpush3.bf16.msra.mxu1 (!%p322_p2), %v1288_v0  ;;  %1208 = vmatprep.mubr.msk.bf16.mxu1 (!%p322_p2), %vm1321_vm0, %v1320_v1  ;;  %v1150_v10 = vld [vmem:[%s1531_s5] ss:$0 sm:$0xff] (!%p322_p2)  ;;  %s1323_s18 = smov (!%p322_p2), 120   ;;  %s1324_s19 = smov (!%p322_p2), 104   ;;  %vm740_vm4 = vcmask (!%p322_p2), 130112   ;;  %vm855_vm5 = vcmask (!%p322_p2), 195712  }
   0x8   : > { %1206 = vmatprep.subr.bf16.mxu1 (!%p322_p2), %v1320_v1  ;;  %1200 = vmatprep.mubr.msk.bf16.mxu0 (!%p322_p2), %vm1321_vm0, %v1320_v1  ;;  %v1146_v12 = vld [vmem:[%s1529_s3] ss:$0 sm:$0xff] (!%p322_p2)  ;;  %s1325_s20 = smov (!%p322_p2), 96   ;;  %s1326_s21 = smov (!%p322_p2), 80   ;;  %vm970_vm6 = vcmask (!%p322_p2), 261312  }
   0x9   : > { %1197 = vmatpush3.bf16.msra.mxu0 (!%p322_p2), %v1290_v3  ;;  %s1327_s22 = smov (!%p322_p2), 72   ;;  %s1329_s25 = smov (!%p322_p2), 8  }
   0xa   : > { %1198 = vmatprep.subr.bf16.mxu0 (!%p322_p2), %v1320_v1  ;;  %s1331_s11 = smov (!%p322_p2), 24  }
   0xb   : > { %1207 = vmatpush3.bf16.msra.mxu1 (!%p322_p2), %v1289_v2 }
   0xc   : > { %1218 = vmatprep.subr.bf16.mxu1 (!%p322_p2), %v1320_v1 }
   0xd   : > { %s1538_s14 = smov (!%p362_p3, %s1137_s14), 1  ;;  %1199 = vmatpush3.bf16.msra.mxu0 %v1291_v4 }
   0xe   : > { %s1170_s23 = sshll.u32 %s1538_s14, 4  ;;  %s1142_s24 = sshll.u32 %s1538_s14, 3  ;;  %1212 = vmatprep.subr.bf16.mxu0 %v1320_v1 }
   0xf   : > { %s370_s27 = scalar_lea.vmem %s1527_s1, %s1170_s23  ;;  %s365_s30 = scalar_lea.vmem %s1526_s0, %s1142_s24 }
  0x10   : > { %v377_v5 = vld [vmem:[%s370_s27] sm:$0xff]  ;;  %v378_v6 = vld [vmem:[%s370_s27 + $0x8] sm:$0xff]  ;;  %s1328_s23 = smov 88  }
  0x11   : > { %v1428_v7 = vld [vmem:[%s365_s30] sm:$0xff]  ;;  %v447_v8 = vpack.c.bf16 %v378_v6, %v377_v5  ;;  %s1330_s30 = smov 16  }
  0x12   : > { %v379_v9 = vpack.c.bf16 %v1428_v7, %v1428_v7 }
  0x13   : > { %1209 = vmatmul.mubr.msk.bf16.vlgmr.msra.gmra.mrb[0].mxu1 %vm403_vm1, %v447_v8 }
  0x14   : > { %1201 = vmatmul.mubr.msk.bf16.vlgmr.msra.gmra.mrb[0].mxu0 %vm403_vm1, %v379_v9  ;;  %1220 = vmatprep.mubr.msk.bf16.mxu1 %vm1321_vm0, %v1320_v1 }
  0x15   : > { %1214 = vmatprep.mubr.msk.bf16.mxu0 %vm1321_vm0, %v1320_v1 }
  0xe6   : > { %v508_v11 = vpop.f32.mrb[0].mxu1 }
  0xe7   : > { %v441_v13 = vpop.f32.mrb[0].mxu0  ;;  %v1210_v14 = vpop.f32.mrb[1].mxu1  ;;  %v509_v18 = vadd.f32 %v1150_v10, %v508_v11 }
  0xe8   : > { %v1202_v15 = vpop.f32.mrb[1].mxu0  ;;  %v511_v16 = vpop.f32.mrb[2].mxu1  ;;  %v442_v21 = vadd.f32 %v1146_v12, %v441_v13 }
  0xe9   : > { %v444_v17 = vpop.f32.mrb[2].mxu0  ;;  %v512_v19 = vadd.f32 %v1150_v10, %v511_v16  ;;  %v1211_v20 = vpop.f32.mrb[3].mxu1 }
  0xea   : > { %v1203_v22 = vpop.f32.mrb[3].mxu0  ;;  %v515_v24 = vpack.c.bf16 %v442_v21, %v442_v21 }
  0xeb   : > { %v1445_v23 = vpack.c.bf16 %v512_v19, %v509_v18 }
  0xed   : > { %744 = vrot.lane.b32.xlu1 %v1445_v23, %s1322_s17  ;;  %629 = vrot.lane.b32.xlu0 %v1445_v23, %s1323_s18  ;;  %v522_v25 = vsel %vm517_vm2, %v1445_v23, 0 }
  0xee   : > { %1213 = vmatpush3.bf16.xpose.msra.mxu0 %v522_v25 }
  0xef   : > { %1224 = vmatprep.subr.bf16.mxu0 %v1320_v1 }
  0xf1   : > { %742 = vrot.lane.b32.xlu1 %v515_v24, %s1322_s17  ;;  %627 = vrot.lane.b32.xlu0 %v515_v24, %s1323_s18 }
  0xf5   : > { %857 = vrot.lane.b32.xlu1 %v515_v24, %s1324_s19  ;;  %859 = vrot.lane.b32.xlu0 %v1445_v23, %s1324_s19 }
  0xf6   : > { %1215 = vmatmul.mubr.msk.bf16.vlgmr.msra.gmra.mrb[4].mxu0 %vm517_vm2, %v515_v24 }
  0xf7   : > { %1226 = vmatprep.mubr.msk.bf16.mxu0 %vm1321_vm0, %v1320_v1 }
 0x15f   : > { %v630_v26 = vpop.permute.xlu0 %629  ;;  %v745_v28 = vpop.permute.xlu1 %744 }
 0x160   : > { %v635_v27 = vsel %vm517_vm2, %v630_v26, 0  ;;  %v750_v30 = vsel %vm517_vm2, %v745_v28, 0 }
 0x161   : > { %1225 = vmatpush3.bf16.xpose.msra.mxu0 %v635_v27 }
 0x162   : > { %1236 = vmatprep.subr.bf16.mxu0 %v1320_v1 }
 0x163   : > { %v628_v29 = vpop.permute.xlu0 %627  ;;  %v743_v32 = vpop.permute.xlu1 %742 }
 0x167   : > { %v860_v31 = vpop.permute.xlu0 %859  ;;  %v858_v34 = vpop.permute.xlu1 %857 }
 0x168   : > { %1227 = vmatmul.mubr.msk.bf16.vlgmr.msra.gmra.mrb[8].mxu0 %vm517_vm2, %v628_v29  ;;  %v865_v33 = vsel %vm517_vm2, %v860_v31, 0 }
 0x169   : > { %1237 = vmatpush3.bf16.xpose.msra.mxu0 %v750_v30  ;;  %1238 = vmatprep.mubr.msk.bf16.mxu0 %vm1321_vm0, %v1320_v1 }
 0x16a   : > { %1248 = vmatprep.subr.bf16.mxu0 %v1320_v1 }
 0x170   : > { %1239 = vmatmul.mubr.msk.bf16.vlgmr.msra.gmra.mrb[12].mxu0 %vm517_vm2, %v743_v32 }
 0x171   : > { %1249 = vmatpush3.bf16.xpose.msra.mxu0 %v865_v33  ;;  %1250 = vmatprep.mubr.msk.bf16.mxu0 %vm1321_vm0, %v1320_v1 }
 0x172   : > { %1260 = vmatprep.subr.bf16.mxu0 %v1320_v1 }
 0x178   : > { %1251 = vmatmul.mubr.msk.bf16.vlgmr.msra.gmra.mrb[16].mxu0 %vm517_vm2, %v858_v34 }
 0x179   : > { %1264 = vmatprep.mubr.msk.bf16.mxu0 %vm1321_vm0, %v1320_v1 }
 0x1c9   : > { %v558_v35 = vpop.f32.mrb[4].mxu0 }
 0x1ca   : > { %v1216_v36 = vpop.f32.mrb[5].mxu0  ;;  %v565_v37 = vsel %vm564_vm3, %v558_v35, -inf }
 0x1cb   : > { %566 = vmax.xlane.f32.xlu0 %v565_v37  ;;  %v561_v38 = vpop.f32.mrb[6].mxu0 }
 0x1cc   : > { %v1217_v39 = vpop.f32.mrb[7].mxu0 }
 0x23b   : > { %v671_v40 = vpop.f32.mrb[8].mxu0 }
 0x23c   : > { %v1228_v41 = vpop.f32.mrb[9].mxu0  ;;  %v677_v42 = vsel %vm564_vm3, %v671_v40, -inf }
 0x23d   : > { %678 = vmax.xlane.f32.xlu1 %v677_v42  ;;  %v674_v43 = vpop.f32.mrb[10].mxu0 }
 0x23e   : > { %v1229_v44 = vpop.f32.mrb[11].mxu0 }
 0x243   : > { %v786_v45 = vpop.f32.mrb[12].mxu0 }
 0x244   : > { %v1240_v46 = vpop.f32.mrb[13].mxu0  ;;  %v792_v47 = vsel %vm564_vm3, %v786_v45, -inf }
 0x245   : > { %793 = vmax.xlane.f32.xlu0 %v792_v47  ;;  %v789_v48 = vpop.f32.mrb[14].mxu0  ;;  %v1293_v46 = vld [vmem:[%s1532_s6 + $0x8] sm:$0xff]  }
 0x246   : > { %v1241_v49 = vpop.f32.mrb[15].mxu0 }
 0x24b   : > { %v901_v50 = vpop.f32.mrb[16].mxu0 }
 0x24c   : > { %v1252_v51 = vpop.f32.mrb[17].mxu0  ;;  %v907_v52 = vsel %vm564_vm3, %v901_v50, -inf }
 0x24d   : > { %908 = vmax.xlane.f32.xlu0 %v907_v52  ;;  %v904_v53 = vpop.f32.mrb[18].mxu0 }
 0x24e   : > { %v1253_v54 = vpop.f32.mrb[19].mxu0 }
 0x258   : > { %v567_v55 = vpop.xlane.xlu0 %566 }
 0x259   : > { %v568_v56 = vsub.f32 %v558_v35, %v567_v55 }
 0x25b   : > { %v569_v57 = vmul.f32 1.442695, %v568_v56 }
 0x25d   : > { %1294 = vpow2.f32 %v569_v57 }
 0x267   : > { %v1295_v58 = vpop.eup %1294 }
 0x268   : > { %v571_v59 = vsel %vm564_vm3, %v1295_v58, 0.0 }
 0x269   : > { %572 = vadd.xlane.f32.xlu1 %v571_v59  ;;  %v1162_v59 = vld [vmem:[%s1533_s7] ss:$0 sm:$0xff] }
 0x27a   : > { %579 = vrot.lane.b32.xlu1 %v1445_v23, %s1325_s20 }
 0x2ca   : > { %v679_v60 = vpop.xlane.xlu1 %678 }
 0x2cb   : > { %v680_v61 = vsub.f32 %v671_v40, %v679_v60 }
 0x2cd   : > { %v681_v62 = vmul.f32 1.442695, %v680_v61 }
 0x2cf   : > { %1296 = vpow2.f32 %v681_v62 }
 0x2d2   : > { %v794_v63 = vpop.xlane.xlu0 %793 }
 0x2d3   : > { %v795_v0 = vsub.f32 %v786_v45, %v794_v63  ;;  %v1292_v45 = vld [vmem:[%s1532_s6] sm:$0xff]  }
 0x2d4   : > { %1261 = vmatpush3.bf16.msra.mxu0 %v1292_v45 }
 0x2d5   : > { %v796_v2 = vmul.f32 1.442695, %v795_v0  ;;  %1262 = vmatprep.subr.bf16.mxu0 %v1320_v1 }
 0x2d7   : > { %1298 = vpow2.f32 %v796_v2 }
 0x2d8   : > { %1263 = vmatpush3.bf16.msra.mxu0 %v1293_v46 }
 0x2d9   : > { %v1297_v3 = vpop.eup %1296 }
 0x2da   : > { %v909_v4 = vpop.xlane.xlu0 %908  ;;  %v683_v5 = vsel %vm564_vm3, %v1297_v3, 0.0 }
 0x2db   : > { %v910_v6 = vsub.f32 %v901_v50, %v909_v4  ;;  %684 = vadd.xlane.f32.xlu0 %v683_v5 }
 0x2dd   : > { %v911_v8 = vmul.f32 1.442695, %v910_v6 }
 0x2df   : > { %1300 = vpow2.f32 %v911_v8 }
 0x2e1   : > { %v1299_v9 = vpop.eup %1298 }
 0x2e2   : > { %v798_v10 = vsel %vm564_vm3, %v1299_v9, 0.0 }
 0x2e3   : > { %799 = vadd.xlane.f32.xlu1 %v798_v10 }
 0x2e9   : > { %v1301_v11 = vpop.eup %1300 }
 0x2ea   : > { %v913_v12 = vsel %vm564_vm3, %v1301_v11, 0.0 }
 0x2eb   : > { %914 = vadd.xlane.f32.xlu0 %v913_v12 }
 0x2f4   : > { %805 = vrot.lane.b32.xlu1 %v1445_v23, %s1326_s21 }
 0x2f6   : > { %v573_v13 = vpop.xlane.xlu1 %572 }
 0x2f7   : > { %v574_v14 = vmax.f32 %v573_v13, 1e-30 }
 0x2f8   : > { %920 = vrot.lane.b32.xlu1 %v1445_v23, %s1327_s22  ;;  %s374_s22 = scalar_lea.vmem %s1536_s10, %s1142_s24 }
 0x2f9   : > { %1302 = vrcp.f32 %v574_v14 }
 0x2fa   : > { %v580_v15 = vpop.permute.xlu1 %579 }
 0x2fb   : > { %1219 = vmatpush3.bf16.msra.mxu1 %v580_v15  ;;  %v1167_v15 = vld [vmem:[%s1535_s9] ss:$0 sm:$0xff] }
 0x2fc   : > { %1230 = vmatprep.subr.bf16.mxu1 %v1320_v1 }
 0x301   : > { %690 = vrot.lane.b32.xlu0 %v1445_v23, %s1328_s23 }
 0x303   : > { %v1303_v16 = vpop.eup %1302 }
 0x304   : > { %v576_v17 = vmul.f32 %v1303_v16, %v1295_v58 }
 0x306   : > { %v577_v18 = vpack.c.bf16 %v576_v17, %v576_v17 }
 0x308   : > { %1221 = vmatmul.mubr.msk.bf16.vlgmr.msra.gmra.mrb[4].mxu1 %vm564_vm3, %v577_v18 }
 0x309   : > { %1232 = vmatprep.mubr.msk.bf16.mxu1 %vm1321_vm0, %v1320_v1 }
 0x368   : > { %v685_v19 = vpop.xlane.xlu0 %684 }
 0x369   : > { %v686_v20 = vmax.f32 %v685_v19, 1e-30 }
 0x36b   : > { %1304 = vrcp.f32 %v686_v20 }
 0x370   : > { %v800_v21 = vpop.xlane.xlu1 %799 }
 0x371   : > { %v801_v22 = vmax.f32 %v800_v21, 1e-30 }
 0x373   : > { %1306 = vrcp.f32 %v801_v22 }
 0x374   : > { %v806_v30 = vpop.permute.xlu1 %805 }
 0x375   : > { %v1305_v24 = vpop.eup %1304 }
 0x376   : > { %v688_v27 = vmul.f32 %v1305_v24, %v1297_v3 }
 0x378   : > { %v915_v25 = vpop.xlane.xlu0 %914  ;;  %v689_v23 = vpack.c.bf16 %v688_v27, %v688_v27  ;;  %v921_v34 = vpop.permute.xlu1 %920 }
 0x379   : > { %v916_v26 = vmax.f32 %v915_v25, 1e-30 }
 0x37b   : > { %1308 = vrcp.f32 %v916_v26 }
 0x37c   : > { %v691_v28 = vpop.permute.xlu0 %690 }
 0x37d   : > { %1231 = vmatpush3.bf16.msra.mxu1 %v691_v28  ;;  %v1307_v29 = vpop.eup %1306 }
 0x37e   : > { %1242 = vmatprep.subr.bf16.mxu1 %v1320_v1  ;;  %v803_v31 = vmul.f32 %v1307_v29, %v1299_v9 }
 0x380   : > { %1233 = vmatmul.mubr.msk.bf16.vlgmr.msra.gmra.mrb[8].mxu1 %vm564_vm3, %v689_v23  ;;  %v804_v32 = vpack.c.bf16 %v803_v31, %v803_v31 }
 0x381   : > { %1243 = vmatpush3.bf16.msra.mxu1 %v806_v30  ;;  %1244 = vmatprep.mubr.msk.bf16.mxu1 %vm1321_vm0, %v1320_v1 }
 0x382   : > { %1254 = vmatprep.subr.bf16.mxu1 %v1320_v1 }
 0x385   : > { %v1309_v33 = vpop.eup %1308 }
 0x386   : > { %v918_v35 = vmul.f32 %v1309_v33, %v1301_v11 }
 0x388   : > { %1245 = vmatmul.mubr.msk.bf16.vlgmr.msra.gmra.mrb[12].mxu1 %vm564_vm3, %v804_v32  ;;  %v919_v36 = vpack.c.bf16 %v918_v35, %v918_v35 }
 0x389   : > { %1255 = vmatpush3.bf16.msra.mxu1 %v921_v34  ;;  %1256 = vmatprep.mubr.msk.bf16.mxu1 %vm1321_vm0, %v1320_v1 }
 0x390   : > { %1257 = vmatmul.mubr.msk.bf16.vlgmr.msra.gmra.mrb[16].mxu1 %vm564_vm3, %v919_v36 }
 0x3db   : > { %v619_v37 = vpop.f32.mrb[4].mxu1 }
 0x3dc   : > { %625 = vst.msk [vmem:[#allocation2] sm:$0xff] %vm517_vm2, %v619_v37  ;;  %v1222_v38 = vpop.f32.mrb[5].mxu1 }
 0x3dd   : > { %v622_v39 = vpop.f32.mrb[6].mxu1 }
 0x3de   : > { %v1223_v40 = vpop.f32.mrb[7].mxu1 }
 0x453   : > { %v730_v41 = vpop.f32.mrb[8].mxu1 }
 0x454   : > { %737 = vrot.lane.b32.xlu0 %v730_v41, %s1329_s25  ;;  %v1234_v42 = vpop.f32.mrb[9].mxu1 }
 0x455   : > { %v733_v43 = vpop.f32.mrb[10].mxu1 }
 0x456   : > { %v1235_v44 = vpop.f32.mrb[11].mxu1 }
 0x45b   : > { %v845_v47 = vpop.f32.mrb[12].mxu1 }
 0x45c   : > { %852 = vrot.lane.b32.xlu1 %v845_v47, %s1330_s30  ;;  %v1246_v48 = vpop.f32.mrb[13].mxu1 }
 0x45d   : > { %v848_v49 = vpop.f32.mrb[14].mxu1 }
 0x45e   : > { %v1247_v50 = vpop.f32.mrb[15].mxu1 }
 0x463   : > { %v960_v51 = vpop.f32.mrb[16].mxu1 }
 0x464   : > { %967 = vrot.lane.b32.xlu0 %v960_v51, %s1331_s11  ;;  %v1258_v52 = vpop.f32.mrb[17].mxu1 }
 0x465   : > { %v963_v53 = vpop.f32.mrb[18].mxu1 }
 0x466   : > { %v1259_v54 = vpop.f32.mrb[19].mxu1 }
 0x4c6   : > { %v738_v55 = vpop.permute.xlu0 %737 }
 0x4c7   : > { %741 = vst.msk [vmem:[#allocation2] sm:$0xff] %vm740_vm4, %v738_v55 }
 0x4ce   : > { %v853_v56 = vpop.permute.xlu1 %852 }
 0x4cf   : > { %856 = vst.msk [vmem:[#allocation2] sm:$0xff] %vm855_vm5, %v853_v56 }
 0x4d6   : > { %v968_v1 = vpop.permute.xlu0 %967 }
 0x4d7   : > { %971 = vst.msk [vmem:[#allocation2] sm:$0xff] %vm970_vm6, %v968_v1 }
 0x4de   : > { %v972_v57 = vld [vmem:[#allocation2] sm:$0xff] }
 0x4df   : > { %v980_v58 = vpack.c.bf16 %v972_v57, %v972_v57 }
 0x4e1   : > { %1265 = vmatmul.mubr.msk.bf16.vlgmr.msra.gmra.mrb[20].mxu0 %vm403_vm1, %v980_v58 }
 0x5b4   : > { %v1036_v60 = vpop.f32.mrb[20].mxu0 }
 0x5b5   : > { %v1037_v61 = vadd.f32 %v1162_v59, %v1036_v60  ;;  %v1266_v62 = vpop.f32.mrb[21].mxu0 }
 0x5b6   : > { %v1039_v63 = vpop.f32.mrb[22].mxu0 }
 0x5b7   : > { %v1267_v0 = vpop.f32.mrb[23].mxu0  ;;  %v1042_v2 = vadd.f32 %v1037_v61, %v1428_v7  ;;  %v1166_v7 = vld [vmem:[%s1534_s8] ss:$0 sm:$0xff] }
 0x5b9   : > { %v1043_v3 = vsel %vm403_vm1, %v1042_v2, 0.0 }
 0x5ba   : > { %1044 = vadd.xlane.f32.xlu1 %v1043_v3 }
 0x647   : > { %v1045_v4 = vpop.xlane.xlu1 %1044 }
 0x648   : > { %v1047_v5 = vmul.f32 0.03125, %v1045_v4 }
 0x64a   : > { %v1048_v6 = vsub.f32 %v1042_v2, %v1047_v5 }
 0x64c   : > { %v1049_v8 = vmul.f32 %v1048_v6, %v1048_v6 }
 0x64e   : > { %v1050_v9 = vsel %vm403_vm1, %v1049_v8, 0.0 }
 0x64f   : > { %1051 = vadd.xlane.f32.xlu0 %v1050_v9 }
 0x6dc   : > { %v1052_v10 = vpop.xlane.xlu0 %1051 }
 0x6dd   : > { %v1053_v11 = vmul.f32 0.03125, %v1052_v10 }
 0x6df   : > { %v1054_v12 = vadd.f32 1e-05, %v1053_v11 }
 0x6e1   : > { %1310 = vrsqrt.f32 %v1054_v12 }
 0x6eb   : > { %v1311_v13 = vpop.eup %1310 }
 0x6ec   : > { %v1056_v14 = vmul.f32 %v1311_v13, %v1048_v6 }
 0x6ee   : > { %v1063_v16 = vmul.f32 %v1166_v7, %v1056_v14 }
 0x6f0   : > { %v1070_v17 = vadd.f32 %v1167_v15, %v1063_v16 }
 0x6f2   : > { %1071 = vst.msk [vmem:[%s374_s22] sm:$0xff] %vm403_vm1, %v1070_v17 }
 0x6f3 PF: > { %s20_s13 = sadd.s32 1, %s1318_s13  }
 0x6f4   : > { %p17_p4 = scmp.ge.s32.totalorder %s20_s13, 4  }
 0x6f6   :  { %19 = sbr.rel (!%p17_p4) target bundleno = 1 (0x1), region = 93 }

</bundles_post_ra>
